<compile_context>
chip_gen: v7x
topology: tpu7x:2x2x1
jax: 0.10.0
libtpu: 0.0.40
codegen_flags: <defaults>
</compile_context>

<pallas_src>
import jax
import jax.numpy as jnp
from jax.experimental import pallas as pl
from jax.experimental.pallas import tpu as pltpu

LEAKY_SLOPE = 0.01   # nn.LeakyReLU() default
BN_EPS = 1e-5        # nn.BatchNorm1d default
LANE = 128
NEG_INF = -1e30


def _round_up(n, m=LANE):
    return ((n + m - 1) // m) * m


def _full_spec(shape):
    # whole-array block, gridless call
    return pl.BlockSpec(shape, lambda: (0,) * len(shape))


# ----------------------------- fused kernel -----------------------------------

def make_fused_mlp_kernel(num_blocks):
    """Kernel args: x_ref, (w_ref, vec_ref) * num_blocks, w_head, b_head, out_ref.

    vec_ref is a packed [3, F_pad] f32 array: row 0 = bias, row 1 = gamma,
    row 2 = beta.  b_head already carries -1e30 on padded class lanes, so no
    masking is needed before the log-softmax reduction.
    """

    def kernel(*refs):
        x_ref = refs[0]
        out_ref = refs[-1]
        p = refs[1:-1]

        h = x_ref[...]                                     # [B, F0] f32
        for l in range(num_blocks):
            w_ref, vec_ref = p[2 * l], p[2 * l + 1]
            vec = vec_ref[...]                             # [3, F_pad] f32
            bias, gamma, beta = vec[0:1, :], vec[1:2, :], vec[2:3, :]

            # Linear (bf16 operands, f32 accumulate on MXU) + bias
            acc = jnp.dot(h.astype(jnp.bfloat16), w_ref[...],
                          preferred_element_type=jnp.float32) + bias
            # LeakyReLU
            acc = jnp.where(acc >= 0.0, acc, LEAKY_SLOPE * acc)
            # BatchNorm1d (batch stats, biased var), single data pass for the
            # moments: var = E[x^2] - E[x]^2, folded into one scale/shift FMA.
            mean = jnp.mean(acc, axis=0, keepdims=True)    # [1, F_pad]
            msq = jnp.mean(acc * acc, axis=0, keepdims=True)
            var = jnp.maximum(msq - mean * mean, 0.0)
            scale = gamma * jax.lax.rsqrt(var + BN_EPS)    # padded gamma = 0
            shift = beta - mean * scale
            h = acc * scale + shift                        # padded lanes stay 0

        # Head: Linear -> LogSoftmax.  Padded class lanes arrive at -1e30 via
        # the bias add (zero weight columns + NEG_INF bias), so they cannot
        # affect the max / sum-exp reductions.
        w_ref, b_ref = p[2 * num_blocks], p[2 * num_blocks + 1]
        logits = jnp.dot(h.astype(jnp.bfloat16), w_ref[...],
                         preferred_element_type=jnp.float32) + b_ref[...]
        m = jnp.max(logits, axis=-1, keepdims=True)
        z = logits - m
        lse = jnp.log(jnp.sum(jnp.exp(z), axis=-1, keepdims=True))
        out_ref[...] = z - lse

    return kernel


# ----------------------------- wrapper -----------------------------------------

def make_image_classifier(input_size, hidden_sizes, output_size):
    num_blocks = len(hidden_sizes)
    hid_pad = [_round_up(h) for h in hidden_sizes]
    out_pad = _round_up(output_size)
    kernel = make_fused_mlp_kernel(num_blocks)

    @jax.jit
    def forward(x, *flat_padded_params):
        B = x.shape[0]
        inputs = (x.astype(jnp.float32),) + tuple(flat_padded_params)

        # Advisory cost estimate (static shapes).
        dims = [input_size] + hid_pad + [out_pad]
        flops = sum(2 * B * a * b for a, b in zip(dims[:-1], dims[1:]))
        transcendentals = B * out_pad + sum(h for h in hid_pad)
        bytes_accessed = sum(a.size * a.dtype.itemsize for a in inputs) + B * out_pad * 4
        cost = pl.CostEstimate(flops=flops, transcendentals=transcendentals,
                               bytes_accessed=bytes_accessed)

        # VMEM budget: double-buffered inputs + output + a few activation slabs,
        # with headroom.  Clamped to [32 MiB default, 64 MiB v7x physical].
        max_dim = max(dims)
        vmem_needed = 2 * sum(a.size * a.dtype.itemsize for a in inputs)
        vmem_needed += 2 * B * out_pad * 4
        vmem_needed += 4 * B * max_dim * 4
        vmem_limit = int(min(max(vmem_needed + (16 << 20), 32 << 20), 64 << 20))

        out = pl.pallas_call(
            kernel,
            out_shape=jax.ShapeDtypeStruct((B, out_pad), jnp.float32),
            in_specs=[_full_spec(a.shape) for a in inputs],
            out_specs=_full_spec((B, out_pad)),
            cost_estimate=cost,
            compiler_params=pltpu.CompilerParams(vmem_limit_bytes=vmem_limit),
        )(*inputs)
        return out[:, :output_size]

    return forward


# ----------------------------- parameter setup ---------------------------------

def init_params(key, input_size, hidden_sizes, output_size):
    """Returns (flat_padded_params, unpadded_params_for_reference)."""
    flat, ref_blocks = [], []
    last, last_pad = input_size, input_size        # no K-padding of the first layer
    for hs in hidden_sizes:
        key, k1, k2 = jax.random.split(key, 3)
        bound = 1.0 / float(last) ** 0.5
        w = jax.random.uniform(k1, (last, hs), jnp.float32, -bound, bound)
        b = jax.random.uniform(k2, (hs,), jnp.float32, -bound, bound)
        gamma = jnp.ones((hs,), jnp.float32)
        beta = jnp.zeros((hs,), jnp.float32)
        out_p = _round_up(hs)
        w_p = jnp.pad(w, ((0, last_pad - last), (0, out_p - hs))).astype(jnp.bfloat16)
        # Pack (bias, gamma, beta) into one [3, out_p] array -> one DMA.
        # Padded gamma lanes are 0, so dead lanes normalize back to exactly 0.
        vec = jnp.stack([jnp.pad(b, (0, out_p - hs)),
                         jnp.pad(gamma, (0, out_p - hs)),
                         jnp.pad(beta, (0, out_p - hs))], axis=0)
        flat += [w_p, vec]
        ref_blocks.append((w, b, gamma, beta))
        last, last_pad = hs, out_p

    key, k1, k2 = jax.random.split(key, 3)
    bound = 1.0 / float(last) ** 0.5
    w = jax.random.uniform(k1, (last, output_size), jnp.float32, -bound, bound)
    b = jax.random.uniform(k2, (output_size,), jnp.float32, -bound, bound)
    out_p = _round_up(output_size)
    w_p = jnp.pad(w, ((0, last_pad - last), (0, out_p - output_size))).astype(jnp.bfloat16)
    # Bake the class-padding mask into the head bias (padded lanes = NEG_INF).
    b_p = jnp.pad(b, (0, out_p - output_size),
                  constant_values=NEG_INF).reshape(1, out_p)
    flat += [w_p, b_p]
    ref_head = (w, b)
    return flat, (ref_blocks, ref_head)


# ----------------------------- reference (pure JAX, same precision policy) -----

def reference_forward(x, ref_params):
    blocks, (wh, bh) = ref_params
    h = x.astype(jnp.float32)
    for (w, b, g, be) in blocks:
        a = jnp.dot(h.astype(jnp.bfloat16), w.astype(jnp.bfloat16),
                    preferred_element_type=jnp.float32) + b
        a = jnp.where(a >= 0.0, a, LEAKY_SLOPE * a)
        mean = a.mean(axis=0, keepdims=True)
        var = ((a - mean) ** 2).mean(axis=0, keepdims=True)
        h = (a - mean) * jax.lax.rsqrt(var + BN_EPS) * g + be
    logits = jnp.dot(h.astype(jnp.bfloat16), wh.astype(jnp.bfloat16),
                     preferred_element_type=jnp.float32) + bh
    return jax.nn.log_softmax(logits, axis=-1)


# ----------------------------- main ---------------------------------------------

if __name__ == "__main__":
    # Flattened 8x8 "images"; batch sized to fill MXU rows (and bf16 sublanes).
    batch = 128
    input_size = 64
    hidden_sizes = [256, 128]
    output_size = 10

    key = jax.random.PRNGKey(0)
    key, kx = jax.random.split(key)
    x = jax.random.normal(kx, (batch, input_size), jnp.float32)

    flat_params, ref_params = init_params(key, input_size, hidden_sizes, output_size)
    forward = make_image_classifier(input_size, hidden_sizes, output_size)

    out = forward(x, *flat_params)
    out = jax.block_until_ready(out)

    assert out.shape == (batch, output_size)
    # log-softmax rows sum to ~1 in prob space
    assert bool(jnp.allclose(jnp.sum(jnp.exp(out), axis=-1), 1.0, atol=1e-4))
    # matches pure-JAX reference with the same precision policy
    ref = reference_forward(x, ref_params)
    assert bool(jnp.allclose(out, ref, atol=5e-3, rtol=5e-3))

    print("KERNEL_OK")
</pallas_src>

<mosaic_0001>
module attributes {stable_mosaic.version = 11 : i64} {
  func.func @kernel(%arg0: memref<128x64xf32, #tpu.memory_space<vmem>>, %arg1: memref<64x256xbf16, #tpu.memory_space<vmem>>, %arg2: memref<3x256xf32, #tpu.memory_space<vmem>>, %arg3: memref<256x128xbf16, #tpu.memory_space<vmem>>, %arg4: memref<3x128xf32, #tpu.memory_space<vmem>>, %arg5: memref<128x128xbf16, #tpu.memory_space<vmem>>, %arg6: memref<1x128xf32, #tpu.memory_space<vmem>>, %arg7: memref<128x128xf32, #tpu.memory_space<vmem>>) attributes {dimension_semantics = [], scalar_prefetch = 0 : i64, scratch_operands = 0 : i64, tpu.core_type = #tpu.core_type<tc>} {
    %c0 = arith.constant 0 : index
    %c0_0 = arith.constant 0 : index
    %0 = vector.load %arg0[%c0, %c0_0] : memref<128x64xf32, #tpu.memory_space<vmem>>, vector<128x64xf32>
    %c0_1 = arith.constant 0 : index
    %c0_2 = arith.constant 0 : index
    %1 = vector.load %arg2[%c0_1, %c0_2] : memref<3x256xf32, #tpu.memory_space<vmem>>, vector<3x256xf32>
    %2 = vector.extract_strided_slice %1 {offsets = [0, 0], sizes = [1, 256], strides = [1, 1]} : vector<3x256xf32> to vector<1x256xf32>
    %3 = vector.extract_strided_slice %1 {offsets = [1, 0], sizes = [1, 256], strides = [1, 1]} : vector<3x256xf32> to vector<1x256xf32>
    %4 = vector.extract_strided_slice %1 {offsets = [2, 0], sizes = [1, 256], strides = [1, 1]} : vector<3x256xf32> to vector<1x256xf32>
    %5 = arith.truncf %0 : vector<128x64xf32> to vector<128x64xbf16>
    %c0_3 = arith.constant 0 : index
    %c0_4 = arith.constant 0 : index
    %6 = vector.load %arg1[%c0_3, %c0_4] : memref<64x256xbf16, #tpu.memory_space<vmem>>, vector<64x256xbf16>
    %cst = arith.constant dense<0.000000e+00> : vector<128x256xf32>
    %7 = tpu.matmul %5, %6, %cst {dimension_numbers = #tpu.dot_dimension_numbers<[1], [0], [0], [1], [0, 0, 1, 1], [], []>} : vector<128x64xbf16>, vector<64x256xbf16>, vector<128x256xf32> -> vector<128x256xf32>
    %8 = vector.broadcast %2 : vector<1x256xf32> to vector<128x256xf32>
    %9 = arith.addf %7, %8 : vector<128x256xf32>
    %cst_5 = arith.constant 0.000000e+00 : f32
    %10 = vector.broadcast %cst_5 : f32 to vector<128x256xf32>
    %11 = arith.cmpf oge, %9, %10 : vector<128x256xf32>
    %cst_6 = arith.constant 0.00999999977 : f32
    %12 = vector.broadcast %cst_6 : f32 to vector<128x256xf32>
    %13 = arith.mulf %12, %9 : vector<128x256xf32>
    %14 = arith.select %11, %9, %13 : vector<128x256xi1>, vector<128x256xf32>
    %cst_7 = arith.constant dense<0.000000e+00> : vector<256xf32>
    %15 = vector.multi_reduction <add>, %14, %cst_7 [0] : vector<128x256xf32> to vector<256xf32>
    %16 = vector.shape_cast %15 : vector<256xf32> to vector<1x256xf32>
    %cst_8 = arith.constant 1.280000e+02 : f32
    %17 = vector.broadcast %cst_8 : f32 to vector<1x256xf32>
    %18 = arith.divf %16, %17 : vector<1x256xf32>
    %19 = arith.mulf %14, %14 : vector<128x256xf32>
    %cst_9 = arith.constant dense<0.000000e+00> : vector<256xf32>
    %20 = vector.multi_reduction <add>, %19, %cst_9 [0] : vector<128x256xf32> to vector<256xf32>
    %21 = vector.shape_cast %20 : vector<256xf32> to vector<1x256xf32>
    %cst_10 = arith.constant 1.280000e+02 : f32
    %22 = vector.broadcast %cst_10 : f32 to vector<1x256xf32>
    %23 = arith.divf %21, %22 : vector<1x256xf32>
    %24 = arith.mulf %18, %18 : vector<1x256xf32>
    %25 = arith.subf %23, %24 : vector<1x256xf32>
    %cst_11 = arith.constant 0.000000e+00 : f32
    %26 = vector.broadcast %cst_11 : f32 to vector<1x256xf32>
    %27 = arith.maximumf %25, %26 : vector<1x256xf32>
    %cst_12 = arith.constant 9.99999974E-6 : f32
    %28 = vector.broadcast %cst_12 : f32 to vector<1x256xf32>
    %29 = arith.addf %27, %28 : vector<1x256xf32>
    %30 = math.rsqrt %29 : vector<1x256xf32>
    %31 = arith.mulf %3, %30 : vector<1x256xf32>
    %32 = arith.mulf %18, %31 : vector<1x256xf32>
    %33 = arith.subf %4, %32 : vector<1x256xf32>
    %34 = vector.broadcast %31 : vector<1x256xf32> to vector<128x256xf32>
    %35 = arith.mulf %14, %34 : vector<128x256xf32>
    %36 = vector.broadcast %33 : vector<1x256xf32> to vector<128x256xf32>
    %37 = arith.addf %35, %36 : vector<128x256xf32>
    %c0_13 = arith.constant 0 : index
    %c0_14 = arith.constant 0 : index
    %38 = vector.load %arg4[%c0_13, %c0_14] : memref<3x128xf32, #tpu.memory_space<vmem>>, vector<3x128xf32>
    %39 = vector.extract_strided_slice %38 {offsets = [0, 0], sizes = [1, 128], strides = [1, 1]} : vector<3x128xf32> to vector<1x128xf32>
    %40 = vector.extract_strided_slice %38 {offsets = [1, 0], sizes = [1, 128], strides = [1, 1]} : vector<3x128xf32> to vector<1x128xf32>
    %41 = vector.extract_strided_slice %38 {offsets = [2, 0], sizes = [1, 128], strides = [1, 1]} : vector<3x128xf32> to vector<1x128xf32>
    %42 = arith.truncf %37 : vector<128x256xf32> to vector<128x256xbf16>
    %c0_15 = arith.constant 0 : index
    %c0_16 = arith.constant 0 : index
    %43 = vector.load %arg3[%c0_15, %c0_16] : memref<256x128xbf16, #tpu.memory_space<vmem>>, vector<256x128xbf16>
    %cst_17 = arith.constant dense<0.000000e+00> : vector<128x128xf32>
    %44 = tpu.matmul %42, %43, %cst_17 {dimension_numbers = #tpu.dot_dimension_numbers<[1], [0], [0], [1], [0, 0, 1, 1], [], []>} : vector<128x256xbf16>, vector<256x128xbf16>, vector<128x128xf32> -> vector<128x128xf32>
    %45 = vector.broadcast %39 : vector<1x128xf32> to vector<128x128xf32>
    %46 = arith.addf %44, %45 : vector<128x128xf32>
    %cst_18 = arith.constant 0.000000e+00 : f32
    %47 = vector.broadcast %cst_18 : f32 to vector<128x128xf32>
    %48 = arith.cmpf oge, %46, %47 : vector<128x128xf32>
    %cst_19 = arith.constant 0.00999999977 : f32
    %49 = vector.broadcast %cst_19 : f32 to vector<128x128xf32>
    %50 = arith.mulf %49, %46 : vector<128x128xf32>
    %51 = arith.select %48, %46, %50 : vector<128x128xi1>, vector<128x128xf32>
    %cst_20 = arith.constant dense<0.000000e+00> : vector<128xf32>
    %52 = vector.multi_reduction <add>, %51, %cst_20 [0] : vector<128x128xf32> to vector<128xf32>
    %53 = vector.shape_cast %52 : vector<128xf32> to vector<1x128xf32>
    %cst_21 = arith.constant 1.280000e+02 : f32
    %54 = vector.broadcast %cst_21 : f32 to vector<1x128xf32>
    %55 = arith.divf %53, %54 : vector<1x128xf32>
    %56 = arith.mulf %51, %51 : vector<128x128xf32>
    %cst_22 = arith.constant dense<0.000000e+00> : vector<128xf32>
    %57 = vector.multi_reduction <add>, %56, %cst_22 [0] : vector<128x128xf32> to vector<128xf32>
    %58 = vector.shape_cast %57 : vector<128xf32> to vector<1x128xf32>
    %cst_23 = arith.constant 1.280000e+02 : f32
    %59 = vector.broadcast %cst_23 : f32 to vector<1x128xf32>
    %60 = arith.divf %58, %59 : vector<1x128xf32>
    %61 = arith.mulf %55, %55 : vector<1x128xf32>
    %62 = arith.subf %60, %61 : vector<1x128xf32>
    %cst_24 = arith.constant 0.000000e+00 : f32
    %63 = vector.broadcast %cst_24 : f32 to vector<1x128xf32>
    %64 = arith.maximumf %62, %63 : vector<1x128xf32>
    %cst_25 = arith.constant 9.99999974E-6 : f32
    %65 = vector.broadcast %cst_25 : f32 to vector<1x128xf32>
    %66 = arith.addf %64, %65 : vector<1x128xf32>
    %67 = math.rsqrt %66 : vector<1x128xf32>
    %68 = arith.mulf %40, %67 : vector<1x128xf32>
    %69 = arith.mulf %55, %68 : vector<1x128xf32>
    %70 = arith.subf %41, %69 : vector<1x128xf32>
    %71 = vector.broadcast %68 : vector<1x128xf32> to vector<128x128xf32>
    %72 = arith.mulf %51, %71 : vector<128x128xf32>
    %73 = vector.broadcast %70 : vector<1x128xf32> to vector<128x128xf32>
    %74 = arith.addf %72, %73 : vector<128x128xf32>
    %75 = arith.truncf %74 : vector<128x128xf32> to vector<128x128xbf16>
    %c0_26 = arith.constant 0 : index
    %c0_27 = arith.constant 0 : index
    %76 = vector.load %arg5[%c0_26, %c0_27] : memref<128x128xbf16, #tpu.memory_space<vmem>>, vector<128x128xbf16>
    %cst_28 = arith.constant dense<0.000000e+00> : vector<128x128xf32>
    %77 = tpu.matmul %75, %76, %cst_28 {dimension_numbers = #tpu.dot_dimension_numbers<[1], [0], [0], [1], [0, 0, 1, 1], [], []>} : vector<128x128xbf16>, vector<128x128xbf16>, vector<128x128xf32> -> vector<128x128xf32>
    %c0_29 = arith.constant 0 : index
    %c0_30 = arith.constant 0 : index
    %78 = vector.load %arg6[%c0_29, %c0_30] : memref<1x128xf32, #tpu.memory_space<vmem>>, vector<1x128xf32>
    %79 = vector.broadcast %78 : vector<1x128xf32> to vector<128x128xf32>
    %80 = arith.addf %77, %79 : vector<128x128xf32>
    %cst_31 = arith.constant dense<0xFF800000> : vector<128xf32>
    %81 = vector.multi_reduction <maximumf>, %80, %cst_31 [1] : vector<128x128xf32> to vector<128xf32>
    %82 = vector.shape_cast %81 : vector<128xf32> to vector<128x1xf32>
    %83 = vector.broadcast %82 : vector<128x1xf32> to vector<128x128xf32>
    %84 = arith.subf %80, %83 : vector<128x128xf32>
    %85 = math.exp %84 : vector<128x128xf32>
    %cst_32 = arith.constant dense<0.000000e+00> : vector<128xf32>
    %86 = vector.multi_reduction <add>, %85, %cst_32 [1] : vector<128x128xf32> to vector<128xf32>
    %87 = vector.shape_cast %86 : vector<128xf32> to vector<128x1xf32>
    %88 = math.log %87 : vector<128x1xf32>
    %89 = vector.broadcast %88 : vector<128x1xf32> to vector<128x128xf32>
    %90 = arith.subf %84, %89 : vector<128x128xf32>
    %c0_33 = arith.constant 0 : index
    %c0_34 = arith.constant 0 : index
    %91 = vector.load %arg7[%c0_33, %c0_34] : memref<128x128xf32, #tpu.memory_space<vmem>>, vector<128x128xf32>
    tpu.vector_store %arg7[%c0_33, %c0_34], %90 {strides = array<i32>} : memref<128x128xf32, #tpu.memory_space<vmem>>, vector<128x128xf32>,
    return
  }
}

</mosaic_0001>

<bundles_post_ra>
// kernel: forward.1
= control target key start
LH: loop header
LB: loop body
LE: loop exit
PB: predicated region body
PF: predicated region fallthrough
CT: control target
= control target key end

     0   :  { %12 = vsyncpa [#allocation3], 0  ;;  %s1679_s24 = smov [#allocation2]   ;;  %s2352_s0 = inlined_call_operand.vmem [shape: f32[128,64], index: 0, kind: input, shape index: {}]   ;;  %s2353_s1 = inlined_call_operand.vmem [shape: bf16[64,256], index: 1, kind: input, shape index: {}]   ;;  %s2354_s2 = inlined_call_operand.vmem [shape: f32[3,256], index: 2, kind: input, shape index: {}]   ;;  %s2355_s3 = inlined_call_operand.vmem [shape: bf16[256,128], index: 3, kind: input, shape index: {}]   ;;  %s2356_s4 = inlined_call_operand.vmem [shape: f32[3,128], index: 4, kind: input, shape index: {}]   ;;  %s2357_s5 = inlined_call_operand.hbm [shape: bf16[128,128], index: 5, kind: input, shape index: {}]   ;;  %s2358_s6 = inlined_call_operand.vmem [shape: f32[1,128], index: 6, kind: input, shape index: {}]   ;;  %s2359_s7 = inlined_call_operand.vmem [shape: f32[128,128], index: 7, kind: output, shape index: {}]  }
   0x1   :  { %s28_s25 = sshll.u32 %s1679_s24, 4  ;;  %s1655_s28 = scalar_lea.hbm %s2357_s5, 1024  ;;  %s29_s25 = int_to_ptr.vmem [resolvable:$true] %s28_s25 }
   0x2   :  { %p1656_p0 = scmp.ne.s32.totalorder %s2357_s5, %s1655_s28  ;;  %p1659_p1 = scmp.lt.u32.totalorder %s1655_s28, %s2357_s5 }
   0x4   :  { %p1661_p2 = pnand %p1659_p1, %p1656_p0 }
   0x6   :  { %1664 = shalt.err (!%p1661_p2)
}
   0x7   :  { %s1665_s10 = scalar_lea.vmem %s29_s25, 1024  ;;  %p1670_p4 = scmp.lt.s32.totalorder %s29_s25, %s29_s25 }
   0x8   :  { %p1666_p3 = scmp.ne.s32.totalorder %s29_s25, %s1665_s10  ;;  %p1671_p5 = scmp.lt.s32.totalorder %s1665_s10, %s1665_s10 }
   0xa   :  { %p1672_p6 = por %p1671_p5, %p1670_p4 }
   0xc   :  { %p1673_p7 = pnand %p1672_p6, %p1666_p3 }
   0xe   :  { %1676 = shalt.err (!%p1673_p7)
}
   0xf   :  { %s1680_s11 = smov 64   ;;  %s1681_s12 = smov 4  }
  0x10   :  { %34 = dma.hbm_to_vmem [thread:$0]  %s2357_s5, 1024, %s29_s25, [#allocation3], %s1680_s11, %s1680_s11, %s1681_s12  }
  0x11   :  { %1677 = dma.done.wait [#allocation3], 1024  }
  0x12   :  { %1678 = vsyncadd [#allocation3], 4294966272  ;;  %v1682_v0 = vmov 0   ;;  %v1549_v1 = vld [vmem:[%s2353_s1 + $0x4] ss:$8 sps:$4 sm:$0xff]   ;;  %vm133_vm0 = vcmask 523264   ;;  %v75_v42 = vlaneseq }
  0x13   :  { %190 = vmatprep.mubr.bf16.mxu0 %v1682_v0  ;;  %v1551_v2 = vld [vmem:[%s2353_s1] ss:$8 sps:$4 sm:$0xff]   ;;  %158 = vmatprep.subr.bf16.mxu0 %v1549_v1  ;;  %v1552_v3 = vld [vmem:[%s2353_s1 + $0x14] ss:$8 sps:$4 sm:$0xff]   ;;  %v1554_v4 = vld [vmem:[%s2353_s1 + $0x10] ss:$8 sps:$4 sm:$0xff]  }
  0x14   :  { %159 = vmatpush1.bf16.msra.mxu0 %v1551_v2  ;;  %v1555_v5 = vld [vmem:[%s2353_s1 + $0x24] ss:$8 sps:$4 sm:$0xff]   ;;  %v1557_v6 = vld [vmem:[%s2353_s1 + $0x20] ss:$8 sps:$4 sm:$0xff]   ;;  %v1558_v7 = vld [vmem:[%s2353_s1 + $0x34] ss:$8 sps:$4 sm:$0xff]  }
  0x15   :  { %160 = vmatprep.subr.bf16.mxu0 %v1552_v3  ;;  %v1560_v8 = vld [vmem:[%s2353_s1 + $0x30] ss:$8 sps:$4 sm:$0xff]   ;;  %v41_v9 = vld [vmem:[%s2352_s0] sm:$0xff]  ;;  %v42_v10 = vld [vmem:[%s2352_s0 + $0x8] sm:$0xff]  ;;  %v1848_v45 = vshrl.u32 %v75_v42, 7 }
  0x16   :  { %v58_v11 = vpack.c.bf16 %v42_v10, %v41_v9  ;;  %v43_v12 = vld [vmem:[%s2352_s0 + $0x10] sm:$0xff]  ;;  %v44_v13 = vld [vmem:[%s2352_s0 + $0x18] sm:$0xff]  ;;  %v45_v15 = vld [vmem:[%s2352_s0 + $0x20] sm:$0xff] }
  0x17   :  { %v59_v14 = vpack.c.bf16 %v44_v13, %v43_v12  ;;  %v46_v16 = vld [vmem:[%s2352_s0 + $0x28] sm:$0xff]  ;;  %v47_v18 = vld [vmem:[%s2352_s0 + $0x30] sm:$0xff]  ;;  %v48_v19 = vld [vmem:[%s2352_s0 + $0x38] sm:$0xff]  ;;  %v1857_v48 = vsub.s32 0, %v1848_v45  ;;  %v81_v51 = vsub.s32 4, %v1848_v45 }
  0x18   :  { %161 = vmatpush1.bf16.msra.mxu0 %v1554_v4  ;;  %v60_v17 = vpack.c.bf16 %v46_v16, %v45_v15  ;;  %v61_v20 = vpack.c.bf16 %v48_v19, %v47_v18  ;;  %v49_v21 = vld [vmem:[%s2352_s0 + $0x40] sm:$0xff]  ;;  %v50_v22 = vld [vmem:[%s2352_s0 + $0x48] sm:$0xff]  ;;  %v51_v24 = vld [vmem:[%s2352_s0 + $0x50] sm:$0xff] }
  0x19   :  { %162 = vmatprep.subr.bf16.mxu0 %v1555_v5  ;;  %v62_v23 = vpack.c.bf16 %v50_v22, %v49_v21  ;;  %v52_v25 = vld [vmem:[%s2352_s0 + $0x58] sm:$0xff]  ;;  %v53_v27 = vld [vmem:[%s2352_s0 + $0x60] sm:$0xff]  ;;  %v54_v28 = vld [vmem:[%s2352_s0 + $0x68] sm:$0xff] }
  0x1a   :  { %v63_v26 = vpack.c.bf16 %v52_v25, %v51_v24  ;;  %v64_v29 = vpack.c.bf16 %v54_v28, %v53_v27  ;;  %v55_v30 = vld [vmem:[%s2352_s0 + $0x70] sm:$0xff]  ;;  %v56_v31 = vld [vmem:[%s2352_s0 + $0x78] sm:$0xff]  ;;  %v1561_v33 = vld [vmem:[%s2355_s3 + $0x40] sm:$0xff]  }
  0x1b   :  { %v65_v32 = vpack.c.bf16 %v56_v31, %v55_v30  ;;  %v1562_v34 = vld [vmem:[%s2355_s3] sm:$0xff]   ;;  %1417 = vmatprep.subr.bf16.mxu1 %v1561_v33  ;;  %v1563_v35 = vld [vmem:[%s2355_s3 + $0x48] sm:$0xff]   ;;  %v1565_v37 = vld [vmem:[%s2355_s3 + $0x50] sm:$0xff]  }
  0x1c   :  { %163 = vmatpush1.bf16.msra.mxu0 %v1557_v6  ;;  %1418 = vmatpush3.bf16.msra.mxu1 %v1562_v34  ;;  %v1564_v36 = vld [vmem:[%s2355_s3 + $0x8] sm:$0xff]   ;;  %v1566_v38 = vld [vmem:[%s2355_s3 + $0x10] sm:$0xff]   ;;  %v1567_v39 = vld [vmem:[%s2355_s3 + $0x58] sm:$0xff]  }
  0x1d   :  { %164 = vmatprep.subr.bf16.mxu0 %v1558_v7  ;;  %1419 = vmatprep.subr.bf16.mxu1 %v1563_v35  ;;  %v1568_v40 = vld [vmem:[%s2355_s3 + $0x18] sm:$0xff]   ;;  %v1569_v41 = vld [vmem:[%s2355_s3 + $0x60] sm:$0xff]   ;;  %v1571_v44 = vld [vmem:[%s2355_s3 + $0x68] sm:$0xff]  }
  0x1e   :  { %v1570_v43 = vld [vmem:[%s2355_s3 + $0x20] sm:$0xff]   ;;  %v1572_v46 = vld [vmem:[%s2355_s3 + $0x28] sm:$0xff]   ;;  %v1573_v47 = vld [vmem:[%s2355_s3 + $0x70] sm:$0xff]  }
  0x1f   :  { %v1574_v49 = vld [vmem:[%s2355_s3 + $0x30] sm:$0xff]   ;;  %v1865_v50 = vld [vmem:[%s2354_s2] sm:$0x77]  ;;  %v1575_v52 = vld [vmem:[%s2355_s3 + $0x78] sm:$0xff]  }
  0x20   :  { %165 = vmatpush1.bf16.msra.mxu0 %v1560_v8  ;;  %1420 = vmatpush3.bf16.msra.mxu1 %v1564_v36  ;;  %v1576_v53 = vld [vmem:[%s2355_s3 + $0x38] sm:$0xff]   ;;  %v78_v54 = vrot.slane %v1865_v50, %v1857_v48  ;;  %v82_v55 = vrot.slane %v1865_v50, %v81_v51 }
  0x21   :  { %1421 = vmatprep.subr.bf16.mxu1 %v1565_v37 }
  0x22   :  { %v1878_v56 = vrot.slane %v78_v54, %v1857_v48  ;;  %v1881_v57 = vrot.slane %v82_v55, %v1857_v48 }
  0x23   :  { %1384 = vmatmul.mubr.msk.bf16.vlgmr.msra.gmra.mrb[0].mxu0 %vm133_vm0, %v58_v11 }
  0x24   :  { %200 = vmatprep.mubr.bf16.mxu0 %v1682_v0  ;;  %1422 = vmatpush3.bf16.msra.mxu1 %v1566_v38 }
  0x25   :  { %1423 = vmatprep.subr.bf16.mxu1 %v1567_v39 }
  0x28   :  { %1424 = vmatpush3.bf16.msra.mxu1 %v1568_v40 }
  0x29   :  { %1425 = vmatprep.subr.bf16.mxu1 %v1569_v41 }
  0x2b   :  { %1385 = vmatmul.mubr.msk.bf16.gmra.mrb[4].mxu0 %vm133_vm0, %v59_v14 }
  0x2c   :  { %210 = vmatprep.mubr.bf16.mxu0 %v1682_v0  ;;  %1426 = vmatpush3.bf16.msra.mxu1 %v1570_v43 }
  0x2d   :  { %1427 = vmatprep.subr.bf16.mxu1 %v1571_v44 }
  0x30   :  { %1428 = vmatpush3.bf16.msra.mxu1 %v1572_v46 }
  0x31   :  { %1429 = vmatprep.subr.bf16.mxu1 %v1573_v47 }
  0x33   :  { %1386 = vmatmul.mubr.msk.bf16.gmra.mrb[8].mxu0 %vm133_vm0, %v60_v17 }
  0x34   :  { %220 = vmatprep.mubr.bf16.mxu0 %v1682_v0  ;;  %1430 = vmatpush3.bf16.msra.mxu1 %v1574_v49 }
  0x35   :  { %1431 = vmatprep.subr.bf16.mxu1 %v1575_v52 }
  0x38   :  { %1432 = vmatpush3.bf16.msra.mxu1 %v1576_v53 }
  0x3b   :  { %1387 = vmatmul.mubr.msk.bf16.gmra.mrb[12].mxu0 %vm133_vm0, %v61_v20 }
  0x3c   :  { %230 = vmatprep.mubr.bf16.mxu0 %v1682_v0 }
  0x43   :  { %1388 = vmatmul.mubr.msk.bf16.gmra.mrb[16].mxu0 %vm133_vm0, %v62_v23 }
  0x44   :  { %240 = vmatprep.mubr.bf16.mxu0 %v1682_v0 }
  0x4b   :  { %1389 = vmatmul.mubr.msk.bf16.gmra.mrb[20].mxu0 %vm133_vm0, %v63_v26 }
  0x4c   :  { %250 = vmatprep.mubr.bf16.mxu0 %v1682_v0 }
  0x53   :  { %1390 = vmatmul.mubr.msk.bf16.gmra.mrb[24].mxu0 %vm133_vm0, %v64_v29 }
  0x54   :  { %260 = vmatprep.mubr.bf16.mxu0 %v1682_v0 }
  0x5b   :  { %1391 = vmatmul.mubr.msk.bf16.gmra.mrb[28].mxu0 %vm133_vm0, %v65_v32 }
  0xf6   :  { %v192_v58 = vpop.f32.mrb[0].mxu0 }
  0xf7   :  { %v193_v59 = vadd.f32 %v192_v58, %v1878_v56  ;;  %v194_v60 = vpop.f32.mrb[1].mxu0 }
  0xf8   :  { %v195_v61 = vadd.f32 %v194_v60, %v1881_v57  ;;  %v196_v62 = vpop.f32.mrb[2].mxu0 }
  0xf9   :  { %v303_v63 = vmul.f32 0.01, %v193_v59  ;;  %v197_v0 = vadd.f32 %v196_v62, %v1878_v56  ;;  %v198_v1 = vpop.f32.mrb[3].mxu0  ;;  %vm271_vm1 = vcmp.ge.f32.partialorder %v193_v59, 0.0 }
  0xfa   :  { %v199_v2 = vadd.f32 %v198_v1, %v1881_v57  ;;  %v304_v4 = vmul.f32 0.01, %v195_v61  ;;  %vm272_vm3 = vcmp.ge.f32.partialorder %v195_v61, 0.0 }
  0xfb   :  { %vm273_vm2 = vcmp.ge.f32.partialorder %v197_v0, 0.0  ;;  %v305_v3 = vmul.f32 0.01, %v197_v0  ;;  %v1887_v6 = vsel %vm271_vm1, %v193_v59, %v303_v63 }
  0xfc   :  { %v306_v5 = vmul.f32 0.01, %v199_v2  ;;  %vm274_vm4 = vcmp.ge.f32.partialorder %v199_v2, 0.0  ;;  %v412_v11 = vmul.f32 %v1887_v6, %v1887_v6  ;;  %v1894_v12 = vsel %vm272_vm3, %v195_v61, %v304_v4 }
  0xfd   :  { %v1889_v7 = vsel %vm273_vm2, %v197_v0, %v305_v3  ;;  %v413_v26 = vmul.f32 %v1894_v12, %v1894_v12 }
  0xfe   :  { %v202_v8 = vpop.f32.mrb[4].mxu0  ;;  %v1896_v13 = vsel %vm274_vm4, %v199_v2, %v306_v5  ;;  %v367_v16 = vadd.f32 %v1889_v7, %v1887_v6  ;;  %v414_v20 = vmul.f32 %v1889_v7, %v1889_v7 }
  0xff   :  { %v203_v9 = vadd.f32 %v202_v8, %v1878_v56  ;;  %v204_v10 = vpop.f32.mrb[5].mxu0  ;;  %v415_v23 = vmul.f32 %v1896_v13, %v1896_v13  ;;  %v388_v30 = vadd.f32 %v1896_v13, %v1894_v12 }
 0x100   :  { %v205_v14 = vadd.f32 %v204_v10, %v1881_v57  ;;  %v206_v15 = vpop.f32.mrb[6].mxu0  ;;  %v444_v33 = vadd.f32 %v414_v20, %v412_v11 }
 0x101   :  { %vm275_vm5 = vcmp.ge.f32.partialorder %v203_v9, 0.0  ;;  %v307_v17 = vmul.f32 0.01, %v203_v9  ;;  %v207_v18 = vadd.f32 %v206_v15, %v1878_v56  ;;  %v208_v19 = vpop.f32.mrb[7].mxu0  ;;  %v465_v36 = vadd.f32 %v415_v23, %v413_v26 }
 0x102   :  { %vm276_vm6 = vcmp.ge.f32.partialorder %v205_v14, 0.0  ;;  %v308_v21 = vmul.f32 0.01, %v205_v14  ;;  %v209_v22 = vadd.f32 %v208_v19, %v1881_v57 }
 0x103   :  { %v1907_v24 = vsel %vm275_vm5, %v203_v9, %v307_v17  ;;  %vm277_vm7 = vcmp.ge.f32.partialorder %v207_v18, 0.0  ;;  %v309_v25 = vmul.f32 0.01, %v207_v18 }
 0x104   :  { %v368_v27 = vadd.f32 %v367_v16, %v1907_v24  ;;  %v416_v28 = vmul.f32 %v1907_v24, %v1907_v24  ;;  %v1914_v29 = vsel %vm276_vm6, %v205_v14, %v308_v21  ;;  %vm278_vm8 = vcmp.ge.f32.partialorder %v209_v22, 0.0 }
 0x105   :  { %v1918_v31 = vsel %vm277_vm7, %v207_v18, %v309_v25  ;;  %v310_v32 = vmul.f32 0.01, %v209_v22  ;;  %v417_v34 = vmul.f32 %v1914_v29, %v1914_v29  ;;  %v389_v37 = vadd.f32 %v388_v30, %v1914_v29 }
 0x106   :  { %v212_v35 = vpop.f32.mrb[8].mxu0  ;;  %v445_v40 = vadd.f32 %v444_v33, %v416_v28  ;;  %v369_v41 = vadd.f32 %v368_v27, %v1918_v31  ;;  %v418_v46 = vmul.f32 %v1918_v31, %v1918_v31 }
 0x107   :  { %v213_v38 = vadd.f32 %v212_v35, %v1878_v56  ;;  %v214_v39 = vpop.f32.mrb[9].mxu0  ;;  %v1925_v42 = vsel %vm278_vm8, %v209_v22, %v310_v32  ;;  %v466_v52 = vadd.f32 %v465_v36, %v417_v34 }
 0x108   :  { %v215_v43 = vadd.f32 %v214_v39, %v1881_v57  ;;  %v216_v44 = vpop.f32.mrb[10].mxu0  ;;  %v419_v55 = vmul.f32 %v1925_v42, %v1925_v42  ;;  %v390_v63 = vadd.f32 %v389_v37, %v1925_v42  ;;  %v446_v3 = vadd.f32 %v445_v40, %v418_v46 }
 0x109   :  { %vm279_vm9 = vcmp.ge.f32.partialorder %v213_v38, 0.0  ;;  %v311_v47 = vmul.f32 0.01, %v213_v38  ;;  %v217_v49 = vadd.f32 %v216_v44, %v1878_v56  ;;  %v218_v51 = vpop.f32.mrb[11].mxu0 }
 0x10a   :  { %vm280_vm10 = vcmp.ge.f32.partialorder %v215_v43, 0.0  ;;  %v312_v53 = vmul.f32 0.01, %v215_v43  ;;  %v219_v54 = vadd.f32 %v218_v51, %v1881_v57  ;;  %v467_v5 = vadd.f32 %v466_v52, %v419_v55 }
 0x10b   :  { %v1934_v58 = vsel %vm279_vm9, %v213_v38, %v311_v47  ;;  %vm281_vm11 = vcmp.ge.f32.partialorder %v217_v49, 0.0  ;;  %v313_v59 = vmul.f32 0.01, %v217_v49 }
 0x10c   :  { %v370_v60 = vadd.f32 %v369_v41, %v1934_v58  ;;  %v420_v61 = vmul.f32 %v1934_v58, %v1934_v58  ;;  %v1939_v62 = vsel %vm280_vm10, %v215_v43, %v312_v53  ;;  %vm282_vm12 = vcmp.ge.f32.partialorder %v219_v54, 0.0 }
 0x10d   :  { %v421_v0 = vmul.f32 %v1939_v62, %v1939_v62  ;;  %v1944_v1 = vsel %vm281_vm11, %v217_v49, %v313_v59  ;;  %v314_v2 = vmul.f32 0.01, %v219_v54  ;;  %v391_v8 = vadd.f32 %v390_v63, %v1939_v62 }
 0x10e   :  { %v222_v4 = vpop.f32.mrb[12].mxu0  ;;  %v447_v14 = vadd.f32 %v446_v3, %v420_v61  ;;  %v371_v15 = vadd.f32 %v370_v60, %v1944_v1  ;;  %v422_v16 = vmul.f32 %v1944_v1, %v1944_v1 }
 0x10f   :  { %v1947_v9 = vsel %vm282_vm12, %v219_v54, %v314_v2  ;;  %v223_v10 = vadd.f32 %v222_v4, %v1878_v56  ;;  %v224_v11 = vpop.f32.mrb[13].mxu0  ;;  %v468_v19 = vadd.f32 %v467_v5, %v421_v0 }
 0x110   :  { %v225_v17 = vadd.f32 %v224_v11, %v1881_v57  ;;  %v226_v18 = vpop.f32.mrb[14].mxu0  ;;  %v423_v23 = vmul.f32 %v1947_v9, %v1947_v9  ;;  %v448_v34 = vadd.f32 %v447_v14, %v422_v16  ;;  %v392_v38 = vadd.f32 %v391_v8, %v1947_v9 }
 0x111   :  { %vm283_vm13 = vcmp.ge.f32.partialorder %v223_v10, 0.0  ;;  %v315_v20 = vmul.f32 0.01, %v223_v10  ;;  %v227_v21 = vadd.f32 %v226_v18, %v1878_v56  ;;  %v228_v22 = vpop.f32.mrb[15].mxu0 }
 0x112   :  { %vm284_vm14 = vcmp.ge.f32.partialorder %v225_v17, 0.0  ;;  %v316_v25 = vmul.f32 0.01, %v225_v17  ;;  %v229_v26 = vadd.f32 %v228_v22, %v1881_v57  ;;  %v469_v39 = vadd.f32 %v468_v19, %v423_v23 }
 0x113   :  { %v1958_v27 = vsel %vm283_vm13, %v223_v10, %v315_v20  ;;  %vm285_vm15 = vcmp.ge.f32.partialorder %v227_v21, 0.0  ;;  %v317_v28 = vmul.f32 0.01, %v227_v21 }
 0x114   :  { %v372_v30 = vadd.f32 %v371_v15, %v1958_v27  ;;  %v424_v32 = vmul.f32 %v1958_v27, %v1958_v27  ;;  %v1963_v33 = vsel %vm284_vm14, %v225_v17, %v316_v25  ;;  %vm286_vm0 = vcmp.ge.f32.partialorder %v229_v26, 0.0 }
 0x115   :  { %v425_v35 = vmul.f32 %v1963_v33, %v1963_v33  ;;  %v1967_v36 = vsel %vm285_vm15, %v227_v21, %v317_v28  ;;  %v318_v37 = vmul.f32 0.01, %v229_v26  ;;  %v393_v49 = vadd.f32 %v392_v38, %v1963_v33 }
 0x116   :  { %v232_v40 = vpop.f32.mrb[16].mxu0  ;;  %v449_v41 = vadd.f32 %v448_v34, %v424_v32  ;;  %v426_v43 = vmul.f32 %v1967_v36, %v1967_v36  ;;  %v373_v51 = vadd.f32 %v372_v30, %v1967_v36 }
 0x117   :  { %v1972_v44 = vsel %vm286_vm0, %v229_v26, %v318_v37  ;;  %v233_v46 = vadd.f32 %v232_v40, %v1878_v56  ;;  %v234_v47 = vpop.f32.mrb[17].mxu0  ;;  %v470_v54 = vadd.f32 %v469_v39, %v425_v35 }
 0x118   :  { %v235_v52 = vadd.f32 %v234_v47, %v1881_v57  ;;  %v236_v53 = vpop.f32.mrb[18].mxu0  ;;  %v427_v61 = vmul.f32 %v1972_v44, %v1972_v44  ;;  %v450_v2 = vadd.f32 %v449_v41, %v426_v43  ;;  %v394_v11 = vadd.f32 %v393_v49, %v1972_v44 }
 0x119   :  { %vm287_vm1 = vcmp.ge.f32.partialorder %v233_v46, 0.0  ;;  %v319_v55 = vmul.f32 0.01, %v233_v46  ;;  %v237_v59 = vadd.f32 %v236_v53, %v1878_v56  ;;  %v238_v60 = vpop.f32.mrb[19].mxu0 }
 0x11a   :  { %vm288_vm2 = vcmp.ge.f32.partialorder %v235_v52, 0.0  ;;  %v320_v63 = vmul.f32 0.01, %v235_v52  ;;  %v239_v0 = vadd.f32 %v238_v60, %v1881_v57  ;;  %v471_v17 = vadd.f32 %v470_v54, %v427_v61 }
 0x11b   :  { %v1982_v3 = vsel %vm287_vm1, %v233_v46, %v319_v55  ;;  %vm289_vm3 = vcmp.ge.f32.partialorder %v237_v59, 0.0  ;;  %v321_v4 = vmul.f32 0.01, %v237_v59 }
 0x11c   :  { %v374_v5 = vadd.f32 %v373_v51, %v1982_v3  ;;  %v428_v8 = vmul.f32 %v1982_v3, %v1982_v3  ;;  %v1987_v10 = vsel %vm288_vm2, %v235_v52, %v320_v63  ;;  %vm290_vm4 = vcmp.ge.f32.partialorder %v239_v0, 0.0 }
 0x11d   :  { %v429_v14 = vmul.f32 %v1987_v10, %v1987_v10  ;;  %v1992_v15 = vsel %vm289_vm3, %v237_v59, %v321_v4  ;;  %v322_v16 = vmul.f32 0.01, %v239_v0  ;;  %v395_v21 = vadd.f32 %v394_v11, %v1987_v10 }
 0x11e   :  { %v451_v18 = vadd.f32 %v450_v2, %v428_v8  ;;  %v430_v19 = vmul.f32 %v1992_v15, %v1992_v15  ;;  %v242_v20 = vpop.f32.mrb[20].mxu0  ;;  %v375_v28 = vadd.f32 %v374_v5, %v1992_v15 }
 0x11f   :  { %v1997_v22 = vsel %vm290_vm4, %v239_v0, %v322_v16  ;;  %v243_v23 = vadd.f32 %v242_v20, %v1878_v56  ;;  %v244_v25 = vpop.f32.mrb[21].mxu0  ;;  %v472_v26 = vadd.f32 %v471_v17, %v429_v14 }
 0x120   :  { %v245_v30 = vadd.f32 %v244_v25, %v1881_v57  ;;  %v246_v32 = vpop.f32.mrb[22].mxu0  ;;  %v431_v34 = vmul.f32 %v1997_v22, %v1997_v22  ;;  %v452_v39 = vadd.f32 %v451_v18, %v430_v19  ;;  %v396_v43 = vadd.f32 %v395_v21, %v1997_v22 }
 0x121   :  { %vm291_vm5 = vcmp.ge.f32.partialorder %v243_v23, 0.0  ;;  %v323_v35 = vmul.f32 0.01, %v243_v23  ;;  %v247_v37 = vadd.f32 %v246_v32, %v1878_v56  ;;  %v248_v38 = vpop.f32.mrb[23].mxu0 }
 0x122   :  { %vm292_vm6 = vcmp.ge.f32.partialorder %v245_v30, 0.0  ;;  %v324_v40 = vmul.f32 0.01, %v245_v30  ;;  %v249_v41 = vadd.f32 %v248_v38, %v1881_v57  ;;  %v473_v53 = vadd.f32 %v472_v26, %v431_v34 }
 0x123   :  { %v2007_v46 = vsel %vm291_vm5, %v243_v23, %v323_v35  ;;  %vm293_vm7 = vcmp.ge.f32.partialorder %v247_v37, 0.0  ;;  %v325_v47 = vmul.f32 0.01, %v247_v37 }
 0x124   :  { %v376_v49 = vadd.f32 %v375_v28, %v2007_v46  ;;  %v432_v51 = vmul.f32 %v2007_v46, %v2007_v46  ;;  %v2012_v52 = vsel %vm292_vm6, %v245_v30, %v324_v40  ;;  %vm294_vm8 = vcmp.ge.f32.partialorder %v249_v41, 0.0 }
 0x125   :  { %v433_v54 = vmul.f32 %v2012_v52, %v2012_v52  ;;  %v2016_v55 = vsel %vm293_vm7, %v247_v37, %v325_v47  ;;  %v326_v59 = vmul.f32 0.01, %v249_v41  ;;  %v397_v61 = vadd.f32 %v396_v43, %v2012_v52 }
 0x126   :  { %v453_v60 = vadd.f32 %v452_v39, %v432_v51  ;;  %v434_v63 = vmul.f32 %v2016_v55, %v2016_v55  ;;  %v252_v0 = vpop.f32.mrb[24].mxu0  ;;  %v377_v11 = vadd.f32 %v376_v49, %v2016_v55 }
 0x127   :  { %v474_v2 = vadd.f32 %v473_v53, %v433_v54  ;;  %v2021_v4 = vsel %vm294_vm8, %v249_v41, %v326_v59  ;;  %v253_v5 = vadd.f32 %v252_v0, %v1878_v56  ;;  %v254_v8 = vpop.f32.mrb[25].mxu0 }
 0x128   :  { %v435_v14 = vmul.f32 %v2021_v4, %v2021_v4  ;;  %v255_v16 = vadd.f32 %v254_v8, %v1881_v57  ;;  %v256_v17 = vpop.f32.mrb[26].mxu0  ;;  %v454_v18 = vadd.f32 %v453_v60, %v434_v63  ;;  %v398_v23 = vadd.f32 %v397_v61, %v2021_v4 }
 0x129   :  { %vm295_vm9 = vcmp.ge.f32.partialorder %v253_v5, 0.0  ;;  %v327_v19 = vmul.f32 0.01, %v253_v5  ;;  %v257_v20 = vadd.f32 %v256_v17, %v1878_v56  ;;  %v258_v21 = vpop.f32.mrb[27].mxu0 }
 0x12a   :  { %vm296_vm10 = vcmp.ge.f32.partialorder %v255_v16, 0.0  ;;  %v328_v25 = vmul.f32 0.01, %v255_v16  ;;  %v259_v26 = vadd.f32 %v258_v21, %v1881_v57  ;;  %v475_v28 = vadd.f32 %v474_v2, %v435_v14 }
 0x12b   :  { %v2031_v30 = vsel %vm295_vm9, %v253_v5, %v327_v19  ;;  %vm297_vm11 = vcmp.ge.f32.partialorder %v257_v20, 0.0  ;;  %v329_v32 = vmul.f32 0.01, %v257_v20 }
 0x12c   :  { %v378_v34 = vadd.f32 %v377_v11, %v2031_v30  ;;  %v436_v35 = vmul.f32 %v2031_v30, %v2031_v30  ;;  %v2036_v37 = vsel %vm296_vm10, %v255_v16, %v328_v25  ;;  %vm298_vm12 = vcmp.ge.f32.partialorder %v259_v26, 0.0 }
 0x12d   :  { %v399_v38 = vadd.f32 %v398_v23, %v2036_v37  ;;  %v437_v39 = vmul.f32 %v2036_v37, %v2036_v37  ;;  %v2041_v40 = vsel %vm297_vm11, %v257_v20, %v329_v32  ;;  %v330_v41 = vmul.f32 0.01, %v259_v26 }
 0x12e   :  { %v455_v43 = vadd.f32 %v454_v18, %v436_v35  ;;  %v262_v47 = vpop.f32.mrb[28].mxu0  ;;  %v438_v51 = vmul.f32 %v2041_v40, %v2041_v40  ;;  %v379_v2 = vadd.f32 %v378_v34, %v2041_v40 }
 0x12f   :  { %v476_v49 = vadd.f32 %v475_v28, %v437_v39  ;;  %v2045_v53 = vsel %vm298_vm12, %v259_v26, %v330_v41  ;;  %v263_v54 = vadd.f32 %v262_v47, %v1878_v56  ;;  %v264_v59 = vpop.f32.mrb[29].mxu0 }
 0x130   :  { %v400_v60 = vadd.f32 %v399_v38, %v2045_v53  ;;  %v439_v61 = vmul.f32 %v2045_v53, %v2045_v53  ;;  %v265_v63 = vadd.f32 %v264_v59, %v1881_v57  ;;  %v266_v0 = vpop.f32.mrb[30].mxu0  ;;  %v456_v18 = vadd.f32 %v455_v43, %v438_v51 }
 0x131   :  { %vm299_vm13 = vcmp.ge.f32.partialorder %v263_v54, 0.0  ;;  %v331_v5 = vmul.f32 0.01, %v263_v54  ;;  %v267_v8 = vadd.f32 %v266_v0, %v1878_v56  ;;  %v268_v11 = vpop.f32.mrb[31].mxu0 }
 0x132   :  { %v477_v14 = vadd.f32 %v476_v49, %v439_v61  ;;  %vm300_vm14 = vcmp.ge.f32.partialorder %v265_v63, 0.0  ;;  %v332_v16 = vmul.f32 0.01, %v265_v63  ;;  %v269_v17 = vadd.f32 %v268_v11, %v1881_v57 }
 0x133   :  { %v2055_v19 = vsel %vm299_vm13, %v263_v54, %v331_v5  ;;  %vm301_vm15 = vcmp.ge.f32.partialorder %v267_v8, 0.0  ;;  %v333_v20 = vmul.f32 0.01, %v267_v8 }
 0x134   :  { %v380_v21 = vadd.f32 %v379_v2, %v2055_v19  ;;  %v440_v23 = vmul.f32 %v2055_v19, %v2055_v19  ;;  %v2060_v25 = vsel %vm300_vm14, %v265_v63, %v332_v16  ;;  %vm302_vm0 = vcmp.ge.f32.partialorder %v269_v17, 0.0 }
 0x135   :  { %v401_v56 = vadd.f32 %v400_v60, %v2060_v25  ;;  %v441_v26 = vmul.f32 %v2060_v25, %v2060_v25  ;;  %v2065_v28 = vsel %vm301_vm15, %v267_v8, %v333_v20  ;;  %v334_v57 = vmul.f32 0.01, %v269_v17 }
 0x136   :  { %v457_v32 = vadd.f32 %v456_v18, %v440_v23  ;;  %v381_v34 = vadd.f32 %v380_v21, %v2065_v28  ;;  %v442_v35 = vmul.f32 %v2065_v28, %v2065_v28 }
 0x137   :  { %v478_v38 = vadd.f32 %v477_v14, %v441_v26  ;;  %v366_v39 = vsel %vm302_vm0, %v269_v17, %v334_v57 }
 0x138   :  { %v382_v41 = vrot.slane %v381_v34, 4  ;;  %v458_v43 = vadd.f32 %v457_v32, %v442_v35  ;;  %v402_v47 = vadd.f32 %v401_v56, %v366_v39  ;;  %v443_v49 = vmul.f32 %v366_v39, %v366_v39 }
 0x13a   :  { %v383_v51 = vadd.f32 %v382_v41, %v381_v34  ;;  %v459_v54 = vrot.slane %v458_v43, 4  ;;  %v403_v59 = vrot.slane %v402_v47, 4  ;;  %v479_v60 = vadd.f32 %v478_v38, %v443_v49 }
 0x13c   :  { %v384_v61 = vrot.slane %v383_v51, 2  ;;  %v460_v63 = vadd.f32 %v459_v54, %v458_v43  ;;  %v404_v0 = vadd.f32 %v403_v59, %v402_v47  ;;  %v480_v2 = vrot.slane %v479_v60, 4 }
 0x13e   :  { %v385_v5 = vadd.f32 %v384_v61, %v383_v51  ;;  %v461_v8 = vrot.slane %v460_v63, 2  ;;  %v405_v11 = vrot.slane %v404_v0, 2  ;;  %v481_v16 = vadd.f32 %v480_v2, %v479_v60 }
 0x140   :  { %v386_v18 = vrot.slane %v385_v5, 1  ;;  %v462_v20 = vadd.f32 %v461_v8, %v460_v63  ;;  %v406_v14 = vadd.f32 %v405_v11, %v404_v0  ;;  %v482_v17 = vrot.slane %v481_v16, 2 }
 0x142   :  { %v387_v21 = vadd.f32 %v386_v18, %v385_v5  ;;  %v463_v23 = vrot.slane %v462_v20, 1  ;;  %v407_v56 = vrot.slane %v406_v14, 1  ;;  %v483_v26 = vadd.f32 %v482_v17, %v481_v16 }
 0x143   :  { %v2071_v16 = vsub.s32 1, %v1848_v45  ;;  %v511_v18 = vsub.s32 5, %v1848_v45 }
 0x144   :  { %v410_v57 = vmul.f32 0.0078125, %v387_v21  ;;  %v464_v32 = vadd.f32 %v463_v23, %v462_v20  ;;  %v408_v34 = vadd.f32 %v407_v56, %v406_v14  ;;  %v484_v35 = vrot.slane %v483_v26, 1 }
 0x146   :  { %v486_v38 = vmul.f32 0.0078125, %v464_v32  ;;  %v488_v41 = vmul.f32 %v410_v57, %v410_v57  ;;  %v411_v43 = vmul.f32 0.0078125, %v408_v34  ;;  %v485_v47 = vadd.f32 %v484_v35, %v483_v26 }
 0x147   :  { %v2079_v32 = vsub.s32 2, %v1848_v45 }
 0x148   :  { %v490_v49 = vsub.f32 %v486_v38, %v488_v41  ;;  %v487_v51 = vmul.f32 0.0078125, %v485_v47  ;;  %v489_v54 = vmul.f32 %v411_v43, %v411_v43  ;;  %v570_v38 = vsub.s32 6, %v1848_v45 }
 0x14a   :  { %v492_v59 = vmax.f32 %v490_v49, 0.0  ;;  %v491_v60 = vsub.f32 %v487_v51, %v489_v54 }
 0x14c   :  { %v494_v61 = vadd.f32 1e-05, %v492_v59  ;;  %v493_v63 = vmax.f32 %v491_v60, 0.0 }
 0x14e   :  { %1585 = vrsqrt.f32 %v494_v61  ;;  %v495_v0 = vadd.f32 1e-05, %v493_v63 }
 0x150   :  { %1587 = vrsqrt.f32 %v495_v0 }
 0x158   :  { %v1586_v2 = vpop.eup %1585 }
 0x15a   :  { %v1588_v5 = vpop.eup %1587 }
 0x15b   :  { %v500_v8 = vcombine.low %v1586_v2, %v1588_v5 }
 0x15d   :  { %v501_v11 = vrot.slane %v500_v8, 7 }
 0x15f   :  { %v503_v20 = vmul.f32 %v501_v11, %v1865_v50 }
 0x161   :  { %v508_v14 = vrot.slane %v503_v20, %v2071_v16  ;;  %v512_v17 = vrot.slane %v503_v20, %v511_v18 }
 0x163   :  { %v515_v21 = vmul.f32 %v508_v14, %v410_v57  ;;  %v516_v23 = vmul.f32 %v512_v17, %v411_v43  ;;  %v526_v56 = vrot.slane %v508_v14, %v2071_v16  ;;  %v530_v26 = vrot.slane %v512_v17, %v2071_v16 }
 0x165   :  { %v519_v34 = vcombine.low %v515_v21, %v516_v23  ;;  %v2081_v35 = vmul.f32 %v530_v26, %v366_v39  ;;  %v532_v41 = vmul.f32 %v530_v26, %v1894_v12  ;;  %v534_v47 = vmul.f32 %v530_v26, %v1896_v13 }
 0x166   :  { %v531_v49 = vmul.f32 %v526_v56, %v1887_v6  ;;  %v533_v57 = vmul.f32 %v526_v56, %v1889_v7  ;;  %v536_v43 = vmul.f32 %v530_v26, %v1914_v29  ;;  %v538_v54 = vmul.f32 %v530_v26, %v1925_v42 }
 0x167   :  { %v520_v51 = vrot.slane %v519_v34, 6  ;;  %v535_v59 = vmul.f32 %v526_v56, %v1907_v24  ;;  %v537_v39 = vmul.f32 %v526_v56, %v1918_v31  ;;  %v540_v60 = vmul.f32 %v530_v26, %v1939_v62 }
 0x168   :  { %v542_v45 = vmul.f32 %v530_v26, %v1947_v9  ;;  %v539_v12 = vmul.f32 %v526_v56, %v1934_v58  ;;  %v541_v13 = vmul.f32 %v526_v56, %v1944_v1  ;;  %v544_v7 = vmul.f32 %v530_v26, %v1963_v33 }
 0x169   :  { %v522_v6 = vsub.f32 %v1865_v50, %v520_v51  ;;  %v546_v29 = vmul.f32 %v530_v26, %v1972_v44  ;;  %v543_v42 = vmul.f32 %v526_v56, %v1958_v27  ;;  %v545_v24 = vmul.f32 %v526_v56, %v1967_v36 }
 0x16a   :  { %v548_v31 = vmul.f32 %v530_v26, %v1987_v10  ;;  %v550_v62 = vmul.f32 %v530_v26, %v1997_v22  ;;  %v547_v9 = vmul.f32 %v526_v56, %v1982_v3  ;;  %v549_v1 = vmul.f32 %v526_v56, %v1992_v15 }
 0x16b   :  { %v567_v58 = vrot.slane %v522_v6, %v2079_v32  ;;  %v571_v61 = vrot.slane %v522_v6, %v570_v38  ;;  %v552_v50 = vmul.f32 %v530_v26, %v2012_v52  ;;  %v554_v33 = vmul.f32 %v530_v26, %v2021_v4 }
 0x16c   :  { %v551_v44 = vmul.f32 %v526_v56, %v2007_v46  ;;  %v556_v27 = vmul.f32 %v530_v26, %v2036_v37  ;;  %v558_v36 = vmul.f32 %v530_v26, %v2045_v53  ;;  %v553_v3 = vmul.f32 %v526_v56, %v2016_v55 }
 0x16d   :  { %v577_v10 = vrot.slane %v567_v58, %v2079_v32  ;;  %v581_v22 = vrot.slane %v571_v61, %v2079_v32  ;;  %v557_v63 = vmul.f32 %v526_v56, %v2041_v40  ;;  %v555_v15 = vmul.f32 %v526_v56, %v2031_v30 }
 0x16e   :  { %v560_v52 = vmul.f32 %v530_v26, %v2060_v25  ;;  %v559_v4 = vmul.f32 %v526_v56, %v2055_v19  ;;  %v561_v46 = vmul.f32 %v526_v56, %v2065_v28 }
 0x16f   :  { %v583_v0 = vadd.f32 %v581_v22, %v532_v41  ;;  %v585_v37 = vadd.f32 %v581_v22, %v534_v47  ;;  %v582_v2 = vadd.f32 %v577_v10, %v531_v49  ;;  %v584_v53 = vadd.f32 %v577_v10, %v533_v57 }
 0x170   :  { %v587_v5 = vadd.f32 %v581_v22, %v536_v43  ;;  %v589_v8 = vadd.f32 %v581_v22, %v538_v54  ;;  %v586_v11 = vadd.f32 %v577_v10, %v535_v59  ;;  %v588_v18 = vadd.f32 %v577_v10, %v537_v39 }
 0x171   :  { %v616_v20 = vpack.c.bf16 %v585_v37, %v583_v0  ;;  %v615_v55 = vpack.c.bf16 %v584_v53, %v582_v2  ;;  %v591_v14 = vadd.f32 %v581_v22, %v540_v60  ;;  %v593_v40 = vadd.f32 %v581_v22, %v542_v45  ;;  %v2123_v0 = vld [vmem:[%s2356_s4] sm:$0x7] }
 0x172   :  { %v618_v17 = vpack.c.bf16 %v589_v8, %v587_v5  ;;  %v617_v30 = vpack.c.bf16 %v588_v18, %v586_v11  ;;  %v590_v21 = vadd.f32 %v577_v10, %v539_v12  ;;  %v592_v25 = vadd.f32 %v577_v10, %v541_v13 }
 0x173   :  { %795 = vmatprep.mubr.bf16.mxu1 %v616_v20  ;;  %v620_v19 = vpack.c.bf16 %v593_v40, %v591_v14  ;;  %v595_v23 = vadd.f32 %v581_v22, %v544_v7  ;;  %v597_v28 = vadd.f32 %v581_v22, %v546_v29  ;;  %v594_v56 = vadd.f32 %v577_v10, %v543_v42 }
 0x174   :  { %796 = vmatmul.mubr.bf16.vlgmr.msra.gmra.mrb[0].mxu1 %v615_v55  ;;  %v619_v26 = vpack.c.bf16 %v592_v25, %v590_v21  ;;  %v596_v34 = vadd.f32 %v577_v10, %v545_v24  ;;  %v599_v38 = vadd.f32 %v581_v22, %v548_v31  ;;  %v601_v41 = vadd.f32 %v581_v22, %v550_v62 }
 0x175   :  { %803 = vmatprep.mubr.bf16.mxu1 %v618_v17  ;;  %v622_v47 = vpack.c.bf16 %v597_v28, %v595_v23  ;;  %v598_v49 = vadd.f32 %v577_v10, %v547_v9  ;;  %v600_v57 = vadd.f32 %v577_v10, %v549_v1  ;;  %v603_v43 = vadd.f32 %v581_v22, %v552_v50 }
 0x176   :  { %v621_v51 = vpack.c.bf16 %v596_v34, %v594_v56  ;;  %v624_v54 = vpack.c.bf16 %v601_v41, %v599_v38  ;;  %v605_v59 = vadd.f32 %v581_v22, %v554_v33  ;;  %v602_v39 = vadd.f32 %v577_v10, %v551_v44  ;;  %v1577_v33 = vld [vmem:[#allocation2] sm:$0xff]   ;;  %v1579_v44 = vld [vmem:[#allocation2 + $0x10] sm:$0xff]  }
 0x177   :  { %v623_v60 = vpack.c.bf16 %v600_v57, %v598_v49  ;;  %v604_v45 = vadd.f32 %v577_v10, %v553_v3  ;;  %v607_v12 = vadd.f32 %v581_v22, %v556_v27  ;;  %v609_v13 = vadd.f32 %v581_v22, %v558_v36  ;;  %1497 = vmatprep.subr.bf16.mxu0 %v1577_v33  ;;  %v1580_v27 = vld [vmem:[#allocation2 + $0x18] sm:$0xff]   ;;  %v1581_v36 = vld [vmem:[#allocation2 + $0x20] sm:$0xff]  }
 0x178   :  { %v626_v6 = vpack.c.bf16 %v605_v59, %v603_v43  ;;  %v606_v7 = vadd.f32 %v577_v10, %v555_v15  ;;  %v608_v29 = vadd.f32 %v577_v10, %v557_v63  ;;  %v611_v42 = vadd.f32 %v581_v22, %v560_v52  ;;  %1529 = vmatprep.subr.bf16.mxu1 %v1577_v33  ;;  %v1584_v3 = vld [vmem:[#allocation2 + $0x38] sm:$0xff]  }
 0x179   :  { %v625_v24 = vpack.c.bf16 %v604_v45, %v602_v39  ;;  %v628_v31 = vpack.c.bf16 %v609_v13, %v607_v12  ;;  %v613_v62 = vadd.f32 %v581_v22, %v2081_v35  ;;  %v610_v58 = vadd.f32 %v577_v10, %v559_v4  ;;  %1498 = vmatpush3.bf16.msra.mxu0 %v1577_v33  ;;  %v1578_v35 = vld [vmem:[#allocation2 + $0x8] sm:$0xff]   ;;  %v1583_v22 = vld [vmem:[#allocation2 + $0x30] sm:$0xff]  }
 0x17a   :  { %v627_v9 = vpack.c.bf16 %v608_v29, %v606_v7  ;;  %v612_v61 = vadd.f32 %v577_v10, %v561_v46  ;;  %1537 = vmatpush3.bf16.msra.mxu1 %v1577_v33  ;;  %1499 = vmatprep.subr.bf16.mxu0 %v1578_v35  ;;  %v1582_v10 = vld [vmem:[#allocation2 + $0x28] sm:$0xff]   ;;  %v2127_v2 = vrot.slane %v2123_v0, %v1857_v48 }
 0x17b   :  { %v630_v1 = vpack.c.bf16 %v613_v62, %v611_v42  ;;  %1530 = vmatprep.subr.bf16.mxu1 %v1578_v35 }
 0x17c   :  { %804 = vmatmul.mubr.bf16.gmra.mrb[4].mxu1 %v617_v30  ;;  %v629_v50 = vpack.c.bf16 %v612_v61, %v610_v58 }
 0x17d   :  { %811 = vmatprep.mubr.bf16.mxu1 %v620_v19  ;;  %1500 = vmatpush3.bf16.msra.mxu0 %v1578_v35 }
 0x17e   :  { %1538 = vmatpush3.bf16.msra.mxu1 %v1578_v35  ;;  %1501 = vmatprep.subr.bf16.mxu0 %v1579_v44 }
 0x17f   :  { %1531 = vmatprep.subr.bf16.mxu1 %v1579_v44 }
 0x181   :  { %1502 = vmatpush3.bf16.msra.mxu0 %v1579_v44 }
 0x182   :  { %1539 = vmatpush3.bf16.msra.mxu1 %v1579_v44  ;;  %1503 = vmatprep.subr.bf16.mxu0 %v1580_v27 }
 0x183   :  { %1532 = vmatprep.subr.bf16.mxu1 %v1580_v27 }
 0x184   :  { %812 = vmatmul.mubr.bf16.gmra.mrb[8].mxu1 %v619_v26 }
 0x185   :  { %819 = vmatprep.mubr.bf16.mxu1 %v622_v47  ;;  %1504 = vmatpush3.bf16.msra.mxu0 %v1580_v27 }
 0x186   :  { %1540 = vmatpush3.bf16.msra.mxu1 %v1580_v27  ;;  %1505 = vmatprep.subr.bf16.mxu0 %v1581_v36 }
 0x187   :  { %1533 = vmatprep.subr.bf16.mxu1 %v1581_v36 }
 0x189   :  { %1506 = vmatpush3.bf16.msra.mxu0 %v1581_v36 }
 0x18a   :  { %1541 = vmatpush3.bf16.msra.mxu1 %v1581_v36  ;;  %1507 = vmatprep.subr.bf16.mxu0 %v1582_v10 }
 0x18b   :  { %1534 = vmatprep.subr.bf16.mxu1 %v1582_v10 }
 0x18c   :  { %820 = vmatmul.mubr.bf16.gmra.mrb[12].mxu1 %v621_v51 }
 0x18d   :  { %827 = vmatprep.mubr.bf16.mxu1 %v624_v54  ;;  %1508 = vmatpush3.bf16.msra.mxu0 %v1582_v10 }
 0x18e   :  { %1542 = vmatpush3.bf16.msra.mxu1 %v1582_v10  ;;  %1509 = vmatprep.subr.bf16.mxu0 %v1583_v22 }
 0x18f   :  { %1535 = vmatprep.subr.bf16.mxu1 %v1583_v22 }
 0x191   :  { %1510 = vmatpush3.bf16.msra.mxu0 %v1583_v22 }
 0x192   :  { %1543 = vmatpush3.bf16.msra.mxu1 %v1583_v22  ;;  %1511 = vmatprep.subr.bf16.mxu0 %v1584_v3 }
 0x193   :  { %1536 = vmatprep.subr.bf16.mxu1 %v1584_v3 }
 0x194   :  { %828 = vmatmul.mubr.bf16.gmra.mrb[16].mxu1 %v623_v60 }
 0x195   :  { %835 = vmatprep.mubr.bf16.mxu1 %v626_v6  ;;  %1512 = vmatpush3.bf16.msra.mxu0 %v1584_v3 }
 0x196   :  { %1544 = vmatpush3.bf16.msra.mxu1 %v1584_v3 }
 0x19c   :  { %836 = vmatmul.mubr.bf16.gmra.mrb[20].mxu1 %v625_v24 }
 0x19d   :  { %843 = vmatprep.mubr.bf16.mxu1 %v628_v31 }
 0x1a4   :  { %844 = vmatmul.mubr.bf16.gmra.mrb[24].mxu1 %v627_v9 }
 0x1a5   :  { %851 = vmatprep.mubr.bf16.mxu1 %v630_v1 }
 0x1ac   :  { %852 = vmatmul.mubr.bf16.gmra.mrb[28].mxu1 %v629_v50 }
 0x247   :  { %v1433_v63 = vpop.f32.mrb[0].mxu1 }
 0x248   :  { %v1434_v15 = vpop.f32.mrb[1].mxu1 }
 0x249   :  { %v1435_v52 = vadd.f32 %v1434_v15, %v1433_v63  ;;  %v1436_v4 = vpop.f32.mrb[2].mxu1 }
 0x24a   :  { %v1437_v46 = vpop.f32.mrb[3].mxu1 }
 0x24b   :  { %v1438_v37 = vadd.f32 %v1437_v46, %v1436_v4  ;;  %v798_v20 = vadd.f32 %v1435_v52, %v2127_v2 }
 0x24d   :  { %v801_v8 = vadd.f32 %v1438_v37, %v2127_v2  ;;  %v876_v30 = vmul.f32 0.01, %v798_v20  ;;  %vm860_vm2 = vcmp.ge.f32.partialorder %v798_v20, 0.0 }
 0x24f   :  { %v1439_v53 = vpop.f32.mrb[4].mxu1  ;;  %v877_v17 = vmul.f32 0.01, %v801_v8  ;;  %vm861_vm1 = vcmp.ge.f32.partialorder %v801_v8, 0.0  ;;  %v2135_v26 = vsel %vm860_vm2, %v798_v20, %v876_v30 }
 0x250   :  { %v1440_v5 = vpop.f32.mrb[5].mxu1  ;;  %v930_v54 = vmul.f32 %v2135_v26, %v2135_v26 }
 0x251   :  { %v1441_v11 = vadd.f32 %v1440_v5, %v1439_v53  ;;  %v1442_v18 = vpop.f32.mrb[6].mxu1  ;;  %v2133_v23 = vsel %vm861_vm1, %v801_v8, %v877_v17 }
 0x252   :  { %v1443_v55 = vpop.f32.mrb[7].mxu1  ;;  %v931_v57 = vmul.f32 %v2133_v23, %v2133_v23  ;;  %v908_v59 = vadd.f32 %v2133_v23, %v2135_v26 }
 0x253   :  { %v806_v14 = vadd.f32 %v1441_v11, %v2127_v2  ;;  %v1444_v40 = vadd.f32 %v1443_v55, %v1442_v18 }
 0x254   :  { %v946_v12 = vadd.f32 %v931_v57, %v930_v54 }
 0x255   :  { %v878_v21 = vmul.f32 0.01, %v806_v14  ;;  %v809_v48 = vadd.f32 %v1444_v40, %v2127_v2  ;;  %vm862_vm3 = vcmp.ge.f32.partialorder %v806_v14, 0.0 }
 0x257   :  { %v1445_v25 = vpop.f32.mrb[8].mxu1  ;;  %v2137_v38 = vsel %vm862_vm3, %v806_v14, %v878_v21  ;;  %v879_v41 = vmul.f32 0.01, %v809_v48  ;;  %vm863_vm4 = vcmp.ge.f32.partialorder %v809_v48, 0.0 }
 0x258   :  { %v1446_v19 = vpop.f32.mrb[9].mxu1  ;;  %v932_v39 = vmul.f32 %v2137_v38, %v2137_v38  ;;  %v909_v13 = vadd.f32 %v908_v59, %v2137_v38 }
 0x259   :  { %v1447_v28 = vadd.f32 %v1446_v19, %v1445_v25  ;;  %v1448_v56 = vpop.f32.mrb[10].mxu1  ;;  %v2149_v60 = vsel %vm863_vm4, %v809_v48, %v879_v41 }
 0x25a   :  { %v1449_v34 = vpop.f32.mrb[11].mxu1  ;;  %v947_v31 = vadd.f32 %v946_v12, %v932_v39  ;;  %v933_v62 = vmul.f32 %v2149_v60, %v2149_v60  ;;  %v910_v1 = vadd.f32 %v909_v13, %v2149_v60 }
 0x25b   :  { %v814_v47 = vadd.f32 %v1447_v28, %v2127_v2  ;;  %v1450_v49 = vadd.f32 %v1449_v34, %v1448_v56 }
 0x25c   :  { %v948_v27 = vadd.f32 %v947_v31, %v933_v62 }
 0x25d   :  { %v880_v43 = vmul.f32 0.01, %v814_v47  ;;  %v817_v51 = vadd.f32 %v1450_v49, %v2127_v2  ;;  %vm864_vm5 = vcmp.ge.f32.partialorder %v814_v47, 0.0 }
 0x25f   :  { %v1451_v45 = vpop.f32.mrb[12].mxu1  ;;  %v2152_v7 = vsel %vm864_vm5, %v814_v47, %v880_v43  ;;  %v881_v29 = vmul.f32 0.01, %v817_v51  ;;  %vm865_vm6 = vcmp.ge.f32.partialorder %v817_v51, 0.0 }
 0x260   :  { %v1452_v6 = vpop.f32.mrb[13].mxu1  ;;  %v934_v50 = vmul.f32 %v2152_v7, %v2152_v7  ;;  %v911_v36 = vadd.f32 %v910_v1, %v2152_v7 }
 0x261   :  { %v1453_v42 = vadd.f32 %v1452_v6, %v1451_v45  ;;  %v1454_v24 = vpop.f32.mrb[14].mxu1  ;;  %v2160_v33 = vsel %vm865_vm6, %v817_v51, %v881_v29 }
 0x262   :  { %v1455_v58 = vpop.f32.mrb[15].mxu1  ;;  %v949_v63 = vadd.f32 %v948_v27, %v934_v50  ;;  %v935_v15 = vmul.f32 %v2160_v33, %v2160_v33  ;;  %v912_v37 = vadd.f32 %v911_v36, %v2160_v33 }
 0x263   :  { %v822_v9 = vadd.f32 %v1453_v42, %v2127_v2  ;;  %v1456_v61 = vadd.f32 %v1455_v58, %v1454_v24 }
 0x264   :  { %v950_v20 = vadd.f32 %v949_v63, %v935_v15 }
 0x265   :  { %vm866_vm7 = vcmp.ge.f32.partialorder %v822_v9, 0.0  ;;  %v882_v35 = vmul.f32 0.01, %v822_v9  ;;  %v825_v44 = vadd.f32 %v1456_v61, %v2127_v2 }
 0x267   :  { %v2164_v10 = vsel %vm866_vm7, %v822_v9, %v882_v35  ;;  %v883_v22 = vmul.f32 0.01, %v825_v44  ;;  %v1457_v3 = vpop.f32.mrb[16].mxu1  ;;  %vm867_vm8 = vcmp.ge.f32.partialorder %v825_v44, 0.0 }
 0x268   :  { %v1458_v52 = vpop.f32.mrb[17].mxu1  ;;  %v936_v53 = vmul.f32 %v2164_v10, %v2164_v10  ;;  %v913_v55 = vadd.f32 %v912_v37, %v2164_v10 }
 0x269   :  { %v1459_v4 = vadd.f32 %v1458_v52, %v1457_v3  ;;  %v1460_v46 = vpop.f32.mrb[18].mxu1  ;;  %v2171_v8 = vsel %vm867_vm8, %v825_v44, %v883_v22 }
 0x26a   :  { %v1461_v5 = vpop.f32.mrb[19].mxu1  ;;  %v951_v17 = vadd.f32 %v950_v20, %v936_v53  ;;  %v937_v30 = vmul.f32 %v2171_v8, %v2171_v8  ;;  %v914_v19 = vadd.f32 %v913_v55, %v2171_v8 }
 0x26b   :  { %v830_v11 = vadd.f32 %v1459_v4, %v2127_v2  ;;  %v1462_v18 = vadd.f32 %v1461_v5, %v1460_v46 }
 0x26c   :  { %v952_v49 = vadd.f32 %v951_v17, %v937_v30 }
 0x26d   :  { %vm868_vm9 = vcmp.ge.f32.partialorder %v830_v11, 0.0  ;;  %v884_v14 = vmul.f32 0.01, %v830_v11  ;;  %v833_v40 = vadd.f32 %v1462_v18, %v2127_v2 }
 0x26f   :  { %v2178_v21 = vsel %vm868_vm9, %v830_v11, %v884_v14  ;;  %vm869_vm10 = vcmp.ge.f32.partialorder %v833_v40, 0.0  ;;  %v885_v48 = vmul.f32 0.01, %v833_v40  ;;  %v1463_v25 = vpop.f32.mrb[20].mxu1 }
 0x270   :  { %v938_v28 = vmul.f32 %v2178_v21, %v2178_v21  ;;  %v1464_v56 = vpop.f32.mrb[21].mxu1  ;;  %v915_v57 = vadd.f32 %v914_v19, %v2178_v21 }
 0x271   :  { %v2183_v34 = vsel %vm869_vm10, %v833_v40, %v885_v48  ;;  %v1465_v41 = vadd.f32 %v1464_v56, %v1463_v25  ;;  %v1466_v47 = vpop.f32.mrb[22].mxu1 }
 0x272   :  { %v1467_v43 = vpop.f32.mrb[23].mxu1  ;;  %v953_v59 = vadd.f32 %v952_v49, %v938_v28  ;;  %v939_v39 = vmul.f32 %v2183_v34, %v2183_v34  ;;  %v916_v13 = vadd.f32 %v915_v57, %v2183_v34 }
 0x273   :  { %v838_v51 = vadd.f32 %v1465_v41, %v2127_v2  ;;  %v1468_v54 = vadd.f32 %v1467_v43, %v1466_v47 }
 0x274   :  { %v954_v24 = vadd.f32 %v953_v59, %v939_v39 }
 0x275   :  { %vm870_vm11 = vcmp.ge.f32.partialorder %v838_v51, 0.0  ;;  %v886_v45 = vmul.f32 0.01, %v838_v51  ;;  %v841_v12 = vadd.f32 %v1468_v54, %v2127_v2 }
 0x277   :  { %v2191_v6 = vsel %vm870_vm11, %v838_v51, %v886_v45  ;;  %vm871_vm12 = vcmp.ge.f32.partialorder %v841_v12, 0.0  ;;  %v887_v29 = vmul.f32 0.01, %v841_v12  ;;  %v1469_v42 = vpop.f32.mrb[24].mxu1 }
 0x278   :  { %v917_v31 = vadd.f32 %v916_v13, %v2191_v6  ;;  %v940_v62 = vmul.f32 %v2191_v6, %v2191_v6  ;;  %v1470_v58 = vpop.f32.mrb[25].mxu1 }
 0x279   :  { %v2196_v9 = vsel %vm871_vm12, %v841_v12, %v887_v29  ;;  %v1471_v61 = vadd.f32 %v1470_v58, %v1469_v42  ;;  %v1472_v1 = vpop.f32.mrb[26].mxu1 }
 0x27a   :  { %v955_v50 = vadd.f32 %v954_v24, %v940_v62  ;;  %v918_v35 = vadd.f32 %v917_v31, %v2196_v9  ;;  %v941_v44 = vmul.f32 %v2196_v9, %v2196_v9  ;;  %v1473_v27 = vpop.f32.mrb[27].mxu1 }
 0x27b   :  { %v846_v36 = vadd.f32 %v1471_v61, %v2127_v2  ;;  %v1474_v22 = vadd.f32 %v1473_v27, %v1472_v1 }
 0x27c   :  { %v956_v3 = vadd.f32 %v955_v50, %v941_v44 }
 0x27d   :  { %vm872_vm13 = vcmp.ge.f32.partialorder %v846_v36, 0.0  ;;  %v888_v63 = vmul.f32 0.01, %v846_v36  ;;  %v849_v15 = vadd.f32 %v1474_v22, %v2127_v2 }
 0x27f   :  { %v904_v52 = vsel %vm872_vm13, %v846_v36, %v888_v63  ;;  %vm873_vm14 = vcmp.ge.f32.partialorder %v849_v15, 0.0  ;;  %v889_v4 = vmul.f32 0.01, %v849_v15  ;;  %v1475_v46 = vpop.f32.mrb[28].mxu1 }
 0x280   :  { %v919_v37 = vadd.f32 %v918_v35, %v904_v52  ;;  %v942_v53 = vmul.f32 %v904_v52, %v904_v52  ;;  %v1476_v5 = vpop.f32.mrb[29].mxu1 }
 0x281   :  { %v905_v11 = vsel %vm873_vm14, %v849_v15, %v889_v4  ;;  %v1477_v18 = vadd.f32 %v1476_v5, %v1475_v46  ;;  %v1478_v20 = vpop.f32.mrb[30].mxu1 }
 0x282   :  { %v957_v55 = vadd.f32 %v956_v3, %v942_v53  ;;  %v920_v14 = vadd.f32 %v919_v37, %v905_v11  ;;  %v943_v40 = vmul.f32 %v905_v11, %v905_v11  ;;  %v1479_v17 = vpop.f32.mrb[31].mxu1 }
 0x283   :  { %v854_v30 = vadd.f32 %v1477_v18, %v2127_v2  ;;  %v1480_v48 = vadd.f32 %v1479_v17, %v1478_v20 }
 0x284   :  { %v958_v25 = vadd.f32 %v957_v55, %v943_v40 }
 0x285   :  { %vm874_vm15 = vcmp.ge.f32.partialorder %v854_v30, 0.0  ;;  %v890_v19 = vmul.f32 0.01, %v854_v30  ;;  %v857_v28 = vadd.f32 %v1480_v48, %v2127_v2 }
 0x287   :  { %v906_v56 = vsel %vm874_vm15, %v854_v30, %v890_v19  ;;  %vm875_vm0 = vcmp.ge.f32.partialorder %v857_v28, 0.0  ;;  %v891_v41 = vmul.f32 0.01, %v857_v28 }
 0x288   :  { %v921_v47 = vadd.f32 %v920_v14, %v906_v56  ;;  %v944_v49 = vmul.f32 %v906_v56, %v906_v56 }
 0x289   :  { %v907_v57 = vsel %vm875_vm0, %v857_v28, %v891_v41 }
 0x28a   :  { %v959_v43 = vadd.f32 %v958_v25, %v944_v49  ;;  %v922_v51 = vadd.f32 %v921_v47, %v907_v57  ;;  %v945_v54 = vmul.f32 %v907_v57, %v907_v57 }
 0x28c   :  { %v923_v59 = vrot.slane %v922_v51, 4  ;;  %v960_v39 = vadd.f32 %v959_v43, %v945_v54 }
 0x28e   :  { %v924_v45 = vadd.f32 %v923_v59, %v922_v51  ;;  %v961_v12 = vrot.slane %v960_v39, 4 }
 0x290   :  { %v925_v13 = vrot.slane %v924_v45, 2  ;;  %v962_v29 = vadd.f32 %v961_v12, %v960_v39 }
 0x292   :  { %v926_v42 = vadd.f32 %v925_v13, %v924_v45  ;;  %v963_v24 = vrot.slane %v962_v29, 2  ;;  %v1408_v45 = vld [vmem:[%s2358_s6] ss:$0 sm:$0xff] }
 0x294   :  { %v927_v31 = vrot.slane %v926_v42, 1  ;;  %v964_v62 = vadd.f32 %v963_v24, %v962_v29 }
 0x296   :  { %v928_v2 = vadd.f32 %v927_v31, %v926_v42  ;;  %v965_v58 = vrot.slane %v964_v62, 1 }
 0x298   :  { %v929_v61 = vmul.f32 0.0078125, %v928_v2  ;;  %v966_v1 = vadd.f32 %v965_v58, %v964_v62 }
 0x29a   :  { %v967_v50 = vmul.f32 0.0078125, %v966_v1  ;;  %v968_v35 = vmul.f32 %v929_v61, %v929_v61 }
 0x29c   :  { %v969_v44 = vsub.f32 %v967_v50, %v968_v35 }
 0x29e   :  { %v970_v27 = vmax.f32 %v969_v44, 0.0 }
 0x2a0   :  { %v971_v36 = vadd.f32 1e-05, %v970_v27 }
 0x2a2   :  { %1589 = vrsqrt.f32 %v971_v36 }
 0x2ac   :  { %v1590_v22 = vpop.eup %1589 }
 0x2ad   :  { %v973_v3 = vmul.f32 %v1590_v22, %v2123_v0 }
 0x2af   :  { %v974_v63 = vmul.f32 %v973_v3, %v929_v61  ;;  %v982_v15 = vrot.slane %v973_v3, %v2071_v16 }
 0x2b1   :  { %v976_v4 = vrot.slane %v974_v63, 7  ;;  %v998_v46 = vmul.f32 %v982_v15, %v907_v57  ;;  %v995_v37 = vmul.f32 %v982_v15, %v904_v52  ;;  %v996_v53 = vmul.f32 %v982_v15, %v905_v11 }
 0x2b2   :  { %v983_v18 = vmul.f32 %v982_v15, %v2135_v26  ;;  %v997_v20 = vmul.f32 %v982_v15, %v906_v56  ;;  %v984_v55 = vmul.f32 %v982_v15, %v2133_v23  ;;  %v985_v14 = vmul.f32 %v982_v15, %v2137_v38 }
 0x2b3   :  { %v978_v5 = vsub.f32 %v2123_v0, %v976_v4  ;;  %v986_v40 = vmul.f32 %v982_v15, %v2149_v60  ;;  %v987_v17 = vmul.f32 %v982_v15, %v2152_v7  ;;  %v988_v16 = vmul.f32 %v982_v15, %v2160_v33 }
 0x2b4   :  { %v993_v52 = vmul.f32 %v982_v15, %v2191_v6  ;;  %v994_v11 = vmul.f32 %v982_v15, %v2196_v9  ;;  %v989_v0 = vmul.f32 %v982_v15, %v2164_v10  ;;  %v990_v26 = vmul.f32 %v982_v15, %v2171_v8 }
 0x2b5   :  { %v1002_v30 = vrot.slane %v978_v5, %v2079_v32  ;;  %v991_v23 = vmul.f32 %v982_v15, %v2178_v21  ;;  %v992_v38 = vmul.f32 %v982_v15, %v2183_v34 }
 0x2b7   :  { %v1018_v48 = vadd.f32 %v1002_v30, %v998_v46  ;;  %v1003_v60 = vadd.f32 %v1002_v30, %v983_v18  ;;  %v1004_v25 = vadd.f32 %v1002_v30, %v984_v55  ;;  %v1015_v7 = vadd.f32 %v1002_v30, %v995_v37 }
 0x2b8   :  { %v1016_v19 = vadd.f32 %v1002_v30, %v996_v53  ;;  %v1005_v32 = vadd.f32 %v1002_v30, %v985_v14  ;;  %v1006_v28 = vadd.f32 %v1002_v30, %v986_v40  ;;  %v1017_v33 = vadd.f32 %v1002_v30, %v997_v20 }
 0x2b9   :  { %v1019_v56 = vpack.c.bf16 %v1004_v25, %v1003_v60  ;;  %v1007_v6 = vadd.f32 %v1002_v30, %v987_v17  ;;  %v1008_v41 = vadd.f32 %v1002_v30, %v988_v16  ;;  %v1009_v9 = vadd.f32 %v1002_v30, %v989_v0 }
 0x2ba   :  { %v1025_v47 = vpack.c.bf16 %v1016_v19, %v1015_v7  ;;  %v1020_v10 = vpack.c.bf16 %v1006_v28, %v1005_v32  ;;  %v1026_v49 = vpack.c.bf16 %v1018_v48, %v1017_v33  ;;  %v1010_v8 = vadd.f32 %v1002_v30, %v990_v26 }
 0x2bb   :  { %1513 = vmatprep.mubr.bf16.mxu0 %v1019_v56  ;;  %v1021_v21 = vpack.c.bf16 %v1008_v41, %v1007_v6  ;;  %v1011_v57 = vadd.f32 %v1002_v30, %v991_v23  ;;  %v1012_v34 = vadd.f32 %v1002_v30, %v992_v38  ;;  %v1013_v43 = vadd.f32 %v1002_v30, %v993_v52 }
 0x2bc   :  { %1525 = vmatprep.mubr.bf16.mxu1 %v1025_v47  ;;  %1514 = vmatmul.mubr.bf16.vlgmr.msra.gmra.mrb[32].mxu0 %v1020_v10  ;;  %v1022_v51 = vpack.c.bf16 %v1010_v8, %v1009_v9  ;;  %v1014_v54 = vadd.f32 %v1002_v30, %v994_v11 }
 0x2bd   :  { %1526 = vmatmul.mubr.bf16.vlgmr.msra.gmra.mrb[32].mxu1 %v1026_v49  ;;  %1517 = vmatprep.mubr.bf16.mxu0 %v1021_v21  ;;  %v1023_v59 = vpack.c.bf16 %v1012_v34, %v1011_v57 }
 0x2be   :  { %v1024_v39 = vpack.c.bf16 %v1014_v54, %v1013_v43 }
 0x2c4   :  { %1518 = vmatmul.mubr.bf16.gmra.mrb[36].mxu0 %v1022_v51 }
 0x2c5   :  { %1521 = vmatprep.mubr.bf16.mxu0 %v1023_v59 }
 0x2cc   :  { %1522 = vmatmul.mubr.bf16.gmra.mrb[40].mxu0 %v1024_v39 }
 0x38f   :  { %v1515_v12 = vpop.f32.mrb[32].mxu0 }
 0x390   :  { %v1141_v13 = vadd.f32 %v1515_v12, %v1408_v45  ;;  %v1527_v29 = vpop.f32.mrb[32].mxu1  ;;  %v1132_v42 = vpop.f32.mrb[33].mxu0 }
 0x391   :  { %v1133_v24 = vadd.f32 %v1408_v45, %v1132_v42  ;;  %v1180_v31 = vpop.f32.mrb[33].mxu1  ;;  %v1516_v62 = vpop.f32.mrb[34].mxu0  ;;  %v2232_v30 = vadd.f32 %v1527_v29, %v1408_v45 }
 0x392   :  { %v1528_v2 = vpop.f32.mrb[34].mxu1  ;;  %1199 = vmax.xlane.f32.xlu1 %v1141_v13  ;;  %v1135_v58 = vpop.f32.mrb[35].mxu0  ;;  %v1144_v1 = vadd.f32 %v1516_v62, %v1408_v45  ;;  %v1181_v50 = vadd.f32 %v1408_v45, %v1180_v31 }
 0x393   :  { %v1183_v61 = vpop.f32.mrb[35].mxu1  ;;  %1195 = vmax.xlane.f32.xlu0 %v1133_v24  ;;  %v1136_v36 = vadd.f32 %v1408_v45, %v1135_v58  ;;  %v2230_v17 = vadd.f32 %v1528_v2, %v1408_v45 }
 0x394   :  { %v1184_v44 = vadd.f32 %v1408_v45, %v1183_v61 }
 0x396   :  { %1201 = vmax.xlane.f32.xlu1 %v1144_v1 }
 0x397   :  { %v1519_v35 = vpop.f32.mrb[36].mxu0  ;;  %1219 = vmax.xlane.f32.xlu0 %v1181_v50 }
 0x398   :  { %v1148_v27 = vpop.f32.mrb[37].mxu0  ;;  %v1157_v15 = vadd.f32 %v1519_v35, %v1408_v45 }
 0x399   :  { %v1520_v22 = vpop.f32.mrb[38].mxu0  ;;  %v1149_v53 = vadd.f32 %v1408_v45, %v1148_v27 }
 0x39a   :  { %1221 = vmax.xlane.f32.xlu1 %v1184_v44  ;;  %v1151_v3 = vpop.f32.mrb[39].mxu0  ;;  %v1160_v63 = vadd.f32 %v1520_v22, %v1408_v45 }
 0x39b   :  { %1197 = vmax.xlane.f32.xlu0 %v1136_v36  ;;  %v1152_v46 = vadd.f32 %v1408_v45, %v1151_v3 }
 0x39e   :  { %1209 = vmax.xlane.f32.xlu1 %v1160_v63 }
 0x39f   :  { %v1523_v4 = vpop.f32.mrb[40].mxu0  ;;  %1207 = vmax.xlane.f32.xlu0 %v1157_v15 }
 0x3a0   :  { %v1164_v37 = vpop.f32.mrb[41].mxu0  ;;  %v1173_v55 = vadd.f32 %v1523_v4, %v1408_v45 }
 0x3a1   :  { %v1524_v5 = vpop.f32.mrb[42].mxu0  ;;  %v2226_v40 = vadd.f32 %v1408_v45, %v1164_v37 }
 0x3a2   :  { %v1167_v18 = vpop.f32.mrb[43].mxu0  ;;  %1205 = vmax.xlane.f32.xlu1 %v1152_v46  ;;  %v1176_v20 = vadd.f32 %v1524_v5, %v1408_v45 }
 0x3a3   :  { %1203 = vmax.xlane.f32.xlu0 %v1149_v53  ;;  %v2224_v14 = vadd.f32 %v1408_v45, %v1167_v18 }
 0x3a6   :  { %1217 = vmax.xlane.f32.xlu1 %v1176_v20 }
 0x3a7   :  { %1215 = vmax.xlane.f32.xlu0 %v1173_v55 }
 0x3aa   :  { %1213 = vmax.xlane.f32.xlu1 %v2224_v14 }
 0x3ab   :  { %1211 = vmax.xlane.f32.xlu0 %v2226_v40 }
 0x3ae   :  { %1225 = vmax.xlane.f32.xlu1 %v2230_v17 }
 0x3af   :  { %1223 = vmax.xlane.f32.xlu0 %v2232_v30 }
 0x41f   :  { %v1200_v16 = vpop.xlane.xlu1 %1199 }
 0x420   :  { %v2236_v52 = vsub.f32 %v1141_v13, %v1200_v16  ;;  %v1196_v11 = vpop.xlane.xlu0 %1195 }
 0x421   :  { %v2238_v0 = vsub.f32 %v1133_v24, %v1196_v11 }
 0x422   :  { %v1247_v26 = vmul.f32 1.442695, %v2236_v52 }
 0x423   :  { %v1243_v23 = vmul.f32 1.442695, %v2238_v0  ;;  %v1202_v38 = vpop.xlane.xlu1 %1201 }
 0x424   :  { %1591 = vpow2.f32 %v1247_v26  ;;  %v2242_v48 = vsub.f32 %v1144_v1, %v1202_v38  ;;  %v1220_v60 = vpop.xlane.xlu0 %1219 }
 0x425   :  { %v2244_v25 = vsub.f32 %v1181_v50, %v1220_v60  ;;  %1593 = vpow2.f32 %v1243_v23 }
 0x426   :  { %v1249_v7 = vmul.f32 1.442695, %v2242_v48 }
 0x427   :  { %v1222_v19 = vpop.xlane.xlu1 %1221  ;;  %v1267_v32 = vmul.f32 1.442695, %v2244_v25 }
 0x428   :  { %1595 = vpow2.f32 %v1249_v7  ;;  %v2248_v28 = vsub.f32 %v1184_v44, %v1222_v19  ;;  %v1198_v33 = vpop.xlane.xlu0 %1197 }
 0x429   :  { %v2250_v56 = vsub.f32 %v1136_v36, %v1198_v33  ;;  %1597 = vpow2.f32 %v1267_v32 }
 0x42a   :  { %v1269_v9 = vmul.f32 1.442695, %v2248_v28 }
 0x42b   :  { %v1245_v6 = vmul.f32 1.442695, %v2250_v56  ;;  %v1210_v41 = vpop.xlane.xlu1 %1209 }
 0x42c   :  { %v2254_v47 = vsub.f32 %v1160_v63, %v1210_v41  ;;  %v1208_v10 = vpop.xlane.xlu0 %1207 }
 0x42d   :  { %1599 = vpow2.f32 %v1245_v6  ;;  %v2256_v49 = vsub.f32 %v1157_v15, %v1208_v10 }
 0x42e   :  { %v1592_v8 = vpop.eup %1591  ;;  %1601 = vpow2.f32 %v1269_v9  ;;  %v1257_v34 = vmul.f32 1.442695, %v2254_v47 }
 0x42f   :  { %v1255_v21 = vmul.f32 1.442695, %v2256_v49  ;;  %v1206_v57 = vpop.xlane.xlu1 %1205  ;;  %1279 = vadd.xlane.f32.xlu0 %v1592_v8  ;;  %v1594_v54 = vpop.eup %1593 }
 0x430   :  { %v2260_v43 = vsub.f32 %v1152_v46, %v1206_v57  ;;  %v1204_v51 = vpop.xlane.xlu0 %1203 }
 0x431   :  { %1603 = vpow2.f32 %v1255_v21  ;;  %v2262_v59 = vsub.f32 %v1149_v53, %v1204_v51 }
 0x432   :  { %v1596_v39 = vpop.eup %1595  ;;  %1605 = vpow2.f32 %v1257_v34  ;;  %v1253_v13 = vmul.f32 1.442695, %v2260_v43 }
 0x433   :  { %v1251_v45 = vmul.f32 1.442695, %v2262_v59  ;;  %1281 = vadd.xlane.f32.xlu1 %v1596_v39  ;;  %v1218_v12 = vpop.xlane.xlu1 %1217  ;;  %1275 = vadd.xlane.f32.xlu0 %v1594_v54  ;;  %v1598_v31 = vpop.eup %1597 }
 0x434   :  { %v2266_v29 = vsub.f32 %v1176_v20, %v1218_v12  ;;  %v1216_v42 = vpop.xlane.xlu0 %1215 }
 0x435   :  { %1607 = vpow2.f32 %v1251_v45  ;;  %v2268_v24 = vsub.f32 %v1173_v55, %v1216_v42 }
 0x436   :  { %1609 = vpow2.f32 %v1253_v13  ;;  %v1265_v61 = vmul.f32 1.442695, %v2266_v29 }
 0x437   :  { %v1600_v62 = vpop.eup %1599  ;;  %v1263_v2 = vmul.f32 1.442695, %v2268_v24  ;;  %v1214_v58 = vpop.xlane.xlu1 %1213  ;;  %1299 = vadd.xlane.f32.xlu0 %v1598_v31 }
 0x438   :  { %v2273_v1 = vsub.f32 %v2224_v14, %v1214_v58  ;;  %1277 = vadd.xlane.f32.xlu1 %v1600_v62  ;;  %v1212_v50 = vpop.xlane.xlu0 %1211  ;;  %v1602_v44 = vpop.eup %1601 }
 0x439   :  { %1611 = vpow2.f32 %v1263_v2  ;;  %v2276_v35 = vsub.f32 %v2226_v40, %v1212_v50 }
 0x43a   :  { %1613 = vpow2.f32 %v1265_v61  ;;  %v1261_v3 = vmul.f32 1.442695, %v2273_v1 }
 0x43b   :  { %v1604_v27 = vpop.eup %1603  ;;  %v1259_v36 = vmul.f32 1.442695, %v2276_v35  ;;  %v1226_v22 = vpop.xlane.xlu1 %1225 }
 0x43c   :  { %1301 = vadd.xlane.f32.xlu1 %v1602_v44  ;;  %1287 = vadd.xlane.f32.xlu0 %v1604_v27  ;;  %v1224_v63 = vpop.xlane.xlu0 %1223  ;;  %v2281_v15 = vsub.f32 %v2230_v17, %v1226_v22  ;;  %v1606_v46 = vpop.eup %1605 }
 0x43d   :  { %1615 = vpow2.f32 %v1259_v36  ;;  %v2284_v4 = vsub.f32 %v2232_v30, %v1224_v63 }
 0x43e   :  { %1617 = vpow2.f32 %v1261_v3  ;;  %v1273_v5 = vmul.f32 1.442695, %v2281_v15 }
 0x43f   :  { %v1608_v37 = vpop.eup %1607  ;;  %v1271_v53 = vmul.f32 1.442695, %v2284_v4 }
 0x440   :  { %1289 = vadd.xlane.f32.xlu1 %v1606_v46  ;;  %1283 = vadd.xlane.f32.xlu0 %v1608_v37  ;;  %v1610_v18 = vpop.eup %1609 }
 0x441   :  { %1619 = vpow2.f32 %v1271_v53 }
 0x442   :  { %1621 = vpow2.f32 %v1273_v5 }
 0x443   :  { %v1612_v20 = vpop.eup %1611 }
 0x444   :  { %1285 = vadd.xlane.f32.xlu1 %v1610_v18  ;;  %1295 = vadd.xlane.f32.xlu0 %v1612_v20  ;;  %v1614_v55 = vpop.eup %1613 }
 0x447   :  { %v1616_v14 = vpop.eup %1615 }
 0x448   :  { %1297 = vadd.xlane.f32.xlu1 %v1614_v55  ;;  %1291 = vadd.xlane.f32.xlu0 %v1616_v14  ;;  %v1618_v40 = vpop.eup %1617 }
 0x44b   :  { %v1620_v17 = vpop.eup %1619 }
 0x44c   :  { %1293 = vadd.xlane.f32.xlu1 %v1618_v40  ;;  %1303 = vadd.xlane.f32.xlu0 %v1620_v17  ;;  %v1622_v30 = vpop.eup %1621 }
 0x450   :  { %1305 = vadd.xlane.f32.xlu1 %v1622_v30 }
 0x4bc   :  { %v1280_v16 = vpop.xlane.xlu0 %1279 }
 0x4bd   :  { %1623 = vlog2.f32 %v1280_v16 }
 0x4c0   :  { %v1282_v11 = vpop.xlane.xlu1 %1281  ;;  %v1276_v26 = vpop.xlane.xlu0 %1275 }
 0x4c1   :  { %1625 = vlog2.f32 %v1282_v11 }
 0x4c2   :  { %1627 = vlog2.f32 %v1276_v26 }
 0x4c4   :  { %v1300_v23 = vpop.xlane.xlu0 %1299 }
 0x4c5   :  { %1629 = vlog2.f32 %v1300_v23  ;;  %v1278_v38 = vpop.xlane.xlu1 %1277 }
 0x4c6   :  { %1631 = vlog2.f32 %v1278_v38 }
 0x4c7   :  { %v1624_v60 = vpop.eup %1623 }
 0x4c8   :  { %v1312_v7 = vmul.f32 0.6931472, %v1624_v60 }
 0x4c9   :  { %v1302_v19 = vpop.xlane.xlu1 %1301  ;;  %v1288_v32 = vpop.xlane.xlu0 %1287 }
 0x4ca   :  { %v1341_v33 = vsub.f32 %v2236_v52, %v1312_v7  ;;  %1633 = vlog2.f32 %v1302_v19 }
 0x4cb   :  { %v1626_v6 = vpop.eup %1625  ;;  %1635 = vlog2.f32 %v1288_v32 }
 0x4cc   :  { %v1628_v41 = vpop.eup %1627  ;;  %1357 = vst [vmem:[%s2359_s7 + $0x10] sm:$0xff] %v1341_v33  ;;  %v1314_v9 = vmul.f32 0.6931472, %v1626_v6 }
 0x4cd   :  { %v1308_v10 = vmul.f32 0.6931472, %v1628_v41  ;;  %v1290_v8 = vpop.xlane.xlu1 %1289  ;;  %v1284_v21 = vpop.xlane.xlu0 %1283 }
 0x4ce   :  { %v1342_v57 = vsub.f32 %v2242_v48, %v1314_v9  ;;  %1637 = vlog2.f32 %v1290_v8 }
 0x4cf   :  { %v1630_v34 = vpop.eup %1629  ;;  %v1339_v51 = vsub.f32 %v2238_v0, %v1308_v10  ;;  %1639 = vlog2.f32 %v1284_v21 }
 0x4d0   :  { %v1632_v52 = vpop.eup %1631  ;;  %1358 = vst [vmem:[%s2359_s7 + $0x18] sm:$0xff] %v1342_v57  ;;  %v1332_v54 = vmul.f32 0.6931472, %v1630_v34 }
 0x4d1   :  { %1355 = vst [vmem:[%s2359_s7] sm:$0xff] %v1339_v51  ;;  %v1310_v39 = vmul.f32 0.6931472, %v1632_v52  ;;  %v1286_v45 = vpop.xlane.xlu1 %1285  ;;  %v1296_v12 = vpop.xlane.xlu0 %1295 }
 0x4d2   :  { %v1351_v48 = vsub.f32 %v2244_v25, %v1332_v54  ;;  %1641 = vlog2.f32 %v1286_v45 }
 0x4d3   :  { %v1340_v13 = vsub.f32 %v2250_v56, %v1310_v39  ;;  %1643 = vlog2.f32 %v1296_v12 }
 0x4d4   :  { %v1634_v0 = vpop.eup %1633  ;;  %1367 = vst [vmem:[%s2359_s7 + $0x60] sm:$0xff] %v1351_v48 }
 0x4d5   :  { %v1636_v42 = vpop.eup %1635  ;;  %1356 = vst [vmem:[%s2359_s7 + $0x8] sm:$0xff] %v1340_v13  ;;  %v1334_v31 = vmul.f32 0.6931472, %v1634_v0  ;;  %v1298_v62 = vpop.xlane.xlu1 %1297 }
 0x4d6   :  { %v1292_v2 = vpop.xlane.xlu0 %1291  ;;  %v1320_v58 = vmul.f32 0.6931472, %v1636_v42  ;;  %1645 = vlog2.f32 %v1298_v62 }
 0x4d7   :  { %v1352_v25 = vsub.f32 %v2248_v28, %v1334_v31  ;;  %1647 = vlog2.f32 %v1292_v2 }
 0x4d8   :  { %v1638_v56 = vpop.eup %1637  ;;  %v1345_v61 = vsub.f32 %v2256_v49, %v1320_v58 }
 0x4d9   :  { %v1640_v50 = vpop.eup %1639  ;;  %1368 = vst [vmem:[%s2359_s7 + $0x68] sm:$0xff] %v1352_v25  ;;  %v1322_v44 = vmul.f32 0.6931472, %v1638_v56  ;;  %v1294_v27 = vpop.xlane.xlu1 %1293 }
 0x4da   :  { %v1304_v36 = vpop.xlane.xlu0 %1303  ;;  %1361 = vst [vmem:[%s2359_s7 + $0x30] sm:$0xff] %v1345_v61  ;;  %v1316_v22 = vmul.f32 0.6931472, %v1640_v50  ;;  %1649 = vlog2.f32 %v1294_v27 }
 0x4db   :  { %v1346_v28 = vsub.f32 %v2254_v47, %v1322_v44  ;;  %1651 = vlog2.f32 %v1304_v36 }
 0x4dc   :  { %v1642_v3 = vpop.eup %1641  ;;  %v1343_v49 = vsub.f32 %v2262_v59, %v1316_v22 }
 0x4dd   :  { %v1644_v63 = vpop.eup %1643  ;;  %1362 = vst [vmem:[%s2359_s7 + $0x38] sm:$0xff] %v1346_v28  ;;  %v1318_v46 = vmul.f32 0.6931472, %v1642_v3  ;;  %v1306_v37 = vpop.xlane.xlu1 %1305 }
 0x4de   :  { %1359 = vst [vmem:[%s2359_s7 + $0x20] sm:$0xff] %v1343_v49  ;;  %v1328_v53 = vmul.f32 0.6931472, %v1644_v63  ;;  %1653 = vlog2.f32 %v1306_v37 }
 0x4df   :  { %v1344_v5 = vsub.f32 %v2260_v43, %v1318_v46 }
 0x4e0   :  { %v1646_v47 = vpop.eup %1645  ;;  %v1349_v18 = vsub.f32 %v2268_v24, %v1328_v53 }
 0x4e1   :  { %v1648_v20 = vpop.eup %1647  ;;  %1360 = vst [vmem:[%s2359_s7 + $0x28] sm:$0xff] %v1344_v5  ;;  %v1330_v59 = vmul.f32 0.6931472, %v1646_v47 }
 0x4e2   :  { %1365 = vst [vmem:[%s2359_s7 + $0x50] sm:$0xff] %v1349_v18  ;;  %v1324_v55 = vmul.f32 0.6931472, %v1648_v20 }
 0x4e3   :  { %v1350_v14 = vsub.f32 %v2266_v29, %v1330_v59 }
 0x4e4   :  { %v1650_v40 = vpop.eup %1649  ;;  %v1347_v17 = vsub.f32 %v2276_v35, %v1324_v55 }
 0x4e5   :  { %v1652_v43 = vpop.eup %1651  ;;  %1366 = vst [vmem:[%s2359_s7 + $0x58] sm:$0xff] %v1350_v14  ;;  %v1326_v24 = vmul.f32 0.6931472, %v1650_v40 }
 0x4e6   :  { %1363 = vst [vmem:[%s2359_s7 + $0x40] sm:$0xff] %v1347_v17  ;;  %v1336_v30 = vmul.f32 0.6931472, %v1652_v43 }
 0x4e7   :  { %v1348_v16 = vsub.f32 %v2273_v1, %v1326_v24 }
 0x4e8   :  { %v1654_v11 = vpop.eup %1653  ;;  %v1353_v26 = vsub.f32 %v2284_v4, %v1336_v30 }
 0x4e9   :  { %1364 = vst [vmem:[%s2359_s7 + $0x48] sm:$0xff] %v1348_v16  ;;  %v1338_v29 = vmul.f32 0.6931472, %v1654_v11 }
 0x4ea   :  { %1369 = vst [vmem:[%s2359_s7 + $0x70] sm:$0xff] %v1353_v26 }
 0x4eb   :  { %v1354_v35 = vsub.f32 %v2281_v15, %v1338_v29 }
 0x4ed   :  { %1370 = vst [vmem:[%s2359_s7 + $0x78] sm:$0xff] %v1354_v35 }
 0x4ee   :  { %1375 = vsyncpa [#allocation3], 1 }

</bundles_post_ra>
